<compile_context>
chip_gen: v5e
topology: v5e:2x2
jax: 0.10.0
libtpu: 0.0.40
codegen_flags: <defaults>
</compile_context>

<pallas_src>
import functools
import math

import jax
import jax.numpy as jnp
from jax.experimental import pallas as pl
from jax.experimental.pallas import tpu as pltpu

LN_EPS = 1e-12          # BertConfig.layer_norm_eps default
MASK_VALUE = -1e9       # additive attention-mask value (safe in f32 and bf16)
INIT_RANGE = 0.02       # BertConfig.initializer_range default


# ------------------------------ small helpers --------------------------------

def _round_up(x, m):
    return ((x + m - 1) // m) * m


def _pick_bt(batch, max_bt=8):
    """Largest divisor of `batch` that is <= max_bt (sequences per encoder step)."""
    bt = 1
    for d in range(1, min(batch, max_bt) + 1):
        if batch % d == 0:
            bt = d
    return bt


def _vmem_limit_bytes():
    """Size the scoped VMEM limit per chip generation (leave headroom)."""
    cap = 64 * 1024 * 1024
    try:
        cap = pltpu.get_tpu_info().vmem_capacity_bytes
    except Exception:
        pass
    # ~75% of physical, capped at 100 MiB (v5e/v6e -> 96 MiB, v7x -> 48 MiB)
    return int(min(cap * 3 // 4, 100 * 1024 * 1024))


# ----------------------------- in-kernel helpers -----------------------------

def _layernorm(x, g, b, eps=LN_EPS):
    mu = jnp.mean(x, axis=-1, keepdims=True)
    var = jnp.mean(jnp.square(x - mu), axis=-1, keepdims=True)
    return (x - mu) * jax.lax.rsqrt(var + eps) * g + b


def _softmax(x):
    m = jnp.max(x, axis=-1, keepdims=True)
    e = jnp.exp(x - m)
    # reciprocal on the EUP slot instead of a VALU divide
    return e * pl.reciprocal(jnp.sum(e, axis=-1, keepdims=True), approx=True)


def _erf_approx(x):
    # Abramowitz & Stegun 7.1.26 polynomial (abs err < 1.5e-7), elementwise only.
    a1, a2, a3, a4, a5 = 0.254829592, -0.284496736, 1.421413741, -1.453152027, 1.061405429
    p = 0.3275911
    s = jnp.where(x >= 0.0, 1.0, -1.0)
    ax = jnp.abs(x)
    t = 1.0 / (1.0 + p * ax)
    y = 1.0 - ((((a5 * t + a4) * t + a3) * t + a2) * t + a1) * t * jnp.exp(-ax * ax)
    return s * y


def _gelu_exact(x):
    # HF "gelu" activation = exact erf GELU
    return 0.5 * x * (1.0 + _erf_approx(x * (1.0 / math.sqrt(2.0))))


# --------------------------------- kernels -----------------------------------

def user_proj_kernel(x_ref, w_ref, b_ref, o_ref):
    # cast to bf16 inside the kernel (no wrapper-side astype pass over HBM)
    o_ref[...] = (jnp.dot(x_ref[...].astype(jnp.bfloat16), w_ref[...],
                          preferred_element_type=jnp.float32) + b_ref[...])


def embed_kernel(we_ref, pos_ref, typ_ref, usr_ref, g_ref, b_ref, out_ref):
    # Fuses both BertEmbeddings passes + user-embedding injection, one sequence.
    we = we_ref[0]            # (S, H) gathered word embeddings
    pos = pos_ref[...]        # (S, H)
    typ = typ_ref[...]        # (1, H)
    g = g_ref[...]
    b = b_ref[...]
    e1 = _layernorm(we + pos + typ, g, b)             # bert.embeddings(input_ids=...)
    x = e1 + usr_ref[0]                               # + projected user embedding
    out_ref[0] = _layernorm(x + pos + typ, g, b)      # bert.embeddings(inputs_embeds=...)


def encoder_stack_kernel(x_ref, m_ref,
                         wqkv_ref, bqkv_ref, wao_ref, bao_ref, g1_ref, b1_ref,
                         wi_ref, bi_ref, wfo_ref, bfo_ref, g2_ref, b2_ref,
                         out_ref, act_ref, ctx_ref, *, num_heads, bt, seq):
    # grid = (B/Bt, L): groups of Bt sequences in parallel (outer), layers
    # sequential (inner).  The running activation lives in the f32 VMEM scratch
    # `act_ref` across the layer axis; layer weights are indexed by the layer
    # grid axis so the BlockSpec pipeline prefetches layer l+1's weights while
    # layer l computes -- weights are streamed from HBM once per Bt-group.
    l = pl.program_id(1)

    @pl.when(l == 0)
    def _():
        act_ref[...] = x_ref[...]

    x = act_ref[...]                 # (Bt*S, H) f32 running activation
    am = m_ref[...]                  # (Bt, 1, S) additive attention mask (f32)
    R, H = x.shape
    hd = H // num_heads

    x_bf = x.astype(jnp.bfloat16)

    # ---- self-attention: fused QKV projection on the whole (Bt*S, H) slab
    # (single weight DMA / MXU push; 1/sqrt(hd) scale is folded into W_q)
    qkv = (jnp.dot(x_bf, wqkv_ref[0], preferred_element_type=jnp.float32)
           + bqkv_ref[0])            # (Bt*S, 3H) f32
    qkv_bf = qkv.astype(jnp.bfloat16)
    q = qkv_bf[:, :H].reshape(bt, seq, H)
    k = qkv_bf[:, H:2 * H].reshape(bt, seq, H)
    v = qkv_bf[:, 2 * H:].reshape(bt, seq, H)

    # per-head attention, batched over the Bt sequences (single-batch-dim
    # dot_general = same form as the flash-attention einsum).  Per-head context
    # is written into lane slices of a VMEM scratch so one full-H output
    # projection (full MXU contraction depth) can be used afterwards.
    for h in range(num_heads):       # static unroll over heads
        lo = h * hd
        qh = q[:, :, lo:lo + hd]                                  # (Bt, S, hd)
        kh = k[:, :, lo:lo + hd]
        vh = v[:, :, lo:lo + hd]
        scores = jax.lax.dot_general(                             # (Bt, S, S)
            qh, kh, (((2,), (2,)), ((0,), (0,))),
            preferred_element_type=jnp.float32) + am
        p = _softmax(scores).astype(jnp.bfloat16)
        ctx_h = jax.lax.dot_general(                              # (Bt, S, hd)
            p, vh, (((2,), (1,)), ((0,), (0,))),
            preferred_element_type=jnp.float32)
        ctx_ref[:, lo:lo + hd] = ctx_h.reshape(R, hd).astype(jnp.bfloat16)

    attn = (jnp.dot(ctx_ref[...], wao_ref[0], preferred_element_type=jnp.float32)
            + bao_ref[0])
    x1 = _layernorm(x + attn, g1_ref[0], b1_ref[0])

    # ---- GELU feed-forward on the flattened (Bt*S, H) activation
    ff = _gelu_exact(jnp.dot(x1.astype(jnp.bfloat16), wi_ref[0],
                             preferred_element_type=jnp.float32) + bi_ref[0])
    y = (jnp.dot(ff.astype(jnp.bfloat16), wfo_ref[0],
                 preferred_element_type=jnp.float32) + bfo_ref[0])
    x2 = _layernorm(x1 + y, g2_ref[0], b2_ref[0])

    act_ref[...] = x2                # carry to next layer

    @pl.when(l == pl.num_programs(1) - 1)
    def _():
        out_ref[...] = x2.astype(out_ref.dtype)   # bf16 writeback (halves HBM traffic)


def out_proj_kernel(x_ref, w_ref, b_ref, o_ref):
    # bf16 x bf16 -> f32 accumulate on the MXU, bias in f32, bf16 store
    o_ref[...] = (jnp.dot(x_ref[...], w_ref[...],
                          preferred_element_type=jnp.float32)
                  + b_ref[...]).astype(o_ref.dtype)


# ------------------------------ pallas wrappers -------------------------------

def user_projection(x, w, b):
    """Small Linear(user_emb_dim -> H): single-block Pallas matmul."""
    B, K = x.shape
    H = w.shape[1]
    return pl.pallas_call(
        user_proj_kernel,
        out_shape=jax.ShapeDtypeStruct((B, H), jnp.float32),
        grid=(1,),
        in_specs=[pl.BlockSpec((B, K), lambda i: (0, 0)),
                  pl.BlockSpec((K, H), lambda i: (0, 0)),
                  pl.BlockSpec((1, H), lambda i: (0, 0))],
        out_specs=pl.BlockSpec((B, H), lambda i: (0, 0)),
    )(x, w, b.reshape(1, H))


def embeddings_fused(word_e, pos_e, type_e, user_e, g, b):
    """Both embedding passes + LN + user injection, tiled over the batch."""
    B, S, H = word_e.shape
    return pl.pallas_call(
        embed_kernel,
        out_shape=jax.ShapeDtypeStruct((B, S, H), jnp.float32),
        grid=(B,),
        in_specs=[
            pl.BlockSpec((1, S, H), lambda i: (i, 0, 0)),
            pl.BlockSpec((S, H), lambda i: (0, 0)),
            pl.BlockSpec((1, H), lambda i: (0, 0)),
            pl.BlockSpec((1, 1, H), lambda i: (i, 0, 0)),
            pl.BlockSpec((1, H), lambda i: (0, 0)),
            pl.BlockSpec((1, H), lambda i: (0, 0)),
        ],
        out_specs=pl.BlockSpec((1, S, H), lambda i: (i, 0, 0)),
        compiler_params=pltpu.CompilerParams(
            dimension_semantics=("parallel",)),
    )(word_e, pos_e, type_e, user_e.reshape(B, 1, H),
      g.reshape(1, H), b.reshape(1, H))


def encoder_stack(x_flat, add_mask, lp, *, num_heads, seq, bt):
    """All L encoder layers in one pallas_call, grid=(B/Bt, L)."""
    R, H = x_flat.shape              # R = B*S
    B = R // seq
    L = lp["wqkv"].shape[0]
    I = lp["wi"].shape[2]
    rows = bt * seq                  # rows processed per grid step

    wmap = lambda b, l: (l, 0, 0)    # layer-indexed weight blocks
    amap = lambda b, l: (b, 0)       # activation blocks (resident across l)
    mmap = lambda b, l: (b, 0, 0)

    kernel = functools.partial(encoder_stack_kernel,
                               num_heads=num_heads, bt=bt, seq=seq)
    return pl.pallas_call(
        kernel,
        out_shape=jax.ShapeDtypeStruct((R, H), jnp.bfloat16),
        grid=(B // bt, L),
        in_specs=[
            pl.BlockSpec((rows, H), amap),          # x (read at l == 0)
            pl.BlockSpec((bt, 1, seq), mmap),       # additive attention mask
            pl.BlockSpec((1, H, 3 * H), wmap), pl.BlockSpec((1, 1, 3 * H), wmap),
            pl.BlockSpec((1, H, H), wmap),     pl.BlockSpec((1, 1, H), wmap),
            pl.BlockSpec((1, 1, H), wmap),     pl.BlockSpec((1, 1, H), wmap),
            pl.BlockSpec((1, H, I), wmap),     pl.BlockSpec((1, 1, I), wmap),
            pl.BlockSpec((1, I, H), wmap),     pl.BlockSpec((1, 1, H), wmap),
            pl.BlockSpec((1, 1, H), wmap),     pl.BlockSpec((1, 1, H), wmap),
        ],
        out_specs=pl.BlockSpec((rows, H), amap),
        scratch_shapes=[pltpu.VMEM((rows, H), jnp.float32),    # running activation
                        pltpu.VMEM((rows, H), jnp.bfloat16)],  # attention context
        compiler_params=pltpu.CompilerParams(
            dimension_semantics=("parallel", "arbitrary"),
            vmem_limit_bytes=_vmem_limit_bytes()),
    )(x_flat, add_mask,
      lp["wqkv"], lp["bqkv"], lp["wao"], lp["bao"], lp["g1"], lp["b1"],
      lp["wi"], lp["bi"], lp["wfo"], lp["bfo"], lp["g2"], lp["b2"])


def output_projection(x, w, b, *, block_rows=512, block_cols=512):
    """logits = x @ W + b, emitted bf16.

    Vocab axis is the OUTER grid loop so each (H, bm) tile of W is DMA'd from
    HBM exactly once; the (much smaller) activation slab is re-streamed per
    vocab tile.  Vocab is padded to a lane-aligned multiple of the column tile.
    """
    N, K = x.shape
    M = w.shape[1]
    bm = min(block_cols, _round_up(M, 128))
    Mp = _round_up(M, bm)
    bn = min(block_rows, _round_up(N, 8))
    Np = _round_up(N, bn)
    if Mp != M:
        w = jnp.pad(w, ((0, 0), (0, Mp - M)))
        b = jnp.pad(b, ((0, Mp - M),))
    if Np != N:
        x = jnp.pad(x, ((0, Np - N), (0, 0)))
    logits = pl.pallas_call(
        out_proj_kernel,
        out_shape=jax.ShapeDtypeStruct((Np, Mp), jnp.bfloat16),
        grid=(Mp // bm, Np // bn),          # vocab outer, rows inner
        in_specs=[pl.BlockSpec((bn, K), lambda j, i: (i, 0)),
                  pl.BlockSpec((K, bm), lambda j, i: (0, j)),
                  pl.BlockSpec((1, bm), lambda j, i: (0, j))],
        out_specs=pl.BlockSpec((bn, bm), lambda j, i: (i, j)),
        compiler_params=pltpu.CompilerParams(
            dimension_semantics=("parallel", "parallel"),
            vmem_limit_bytes=_vmem_limit_bytes()),
    )(x, w, b.reshape(1, Mp))
    if (Np, Mp) != (N, M):
        logits = logits[:N, :M]
    return logits


# ------------------------------- full forward ---------------------------------

def bert4rec_forward(params, input_seq, user_profile_emb, *, num_heads, max_bt=8):
    B, S = input_seq.shape
    H = params["word_emb"].shape[1]

    # glue: mask + embedding-table gather (data-dependent gather kept in plain JAX)
    # TODO(synk): fuse this gather into the embed kernel (scalar-prefetched
    # input_seq + pl.Element row index_map) to avoid materializing (B,S,H) in HBM.
    mask = (input_seq != 0).astype(jnp.float32)
    add_mask = ((1.0 - mask) * MASK_VALUE).reshape(B, 1, S)
    word_e = jnp.take(params["word_emb"], input_seq, axis=0)     # (B, S, H)
    pos_e = params["pos_emb"][:S]                                # (S, H)
    type_e = params["type_emb"]                                  # (1, H)

    # user_emb_projection (Pallas matmul, bf16 inside the kernel)
    user_e = user_projection(user_profile_emb, params["user_w"], params["user_b"])

    # two embedding passes + LayerNorms + user injection (fused, tiled over B)
    x = embeddings_fused(word_e, pos_e, type_e, user_e,
                         params["emb_ln_g"], params["emb_ln_b"])  # (B, S, H) f32

    # BERT encoder: all layers in one pallas_call, Bt sequences per grid step
    bt = _pick_bt(B, max_bt)   # tune max_bt per chip (smaller on v7x, larger on v5e/v6e)
    x_enc = encoder_stack(x.reshape(B * S, H), add_mask, params["layers"],
                          num_heads=num_heads, seq=S, bt=bt)      # (B*S, H) bf16

    # output projection to item vocabulary (vocab-outer tiled matmul, bf16 logits)
    logits = output_projection(x_enc, params["out_w"], params["out_b"])
    return logits.reshape(B, S, -1)


# ----------------------------- deterministic init ------------------------------

def init_params(key, item_num, maxlen, hidden, num_layers, num_heads, user_emb_dim):
    vocab = item_num + 1
    inter = hidden * 4
    L = num_layers
    keys = jax.random.split(key, 16)
    normal = lambda k, shape: INIT_RANGE * jax.random.normal(k, shape, jnp.float32)
    bf = lambda a: a.astype(jnp.bfloat16)   # weights streamed / multiplied in bf16

    # fold the 1/sqrt(head_dim) attention scale into the Q slice of the fused
    # QKV weight (Q bias is zero-init, so no bias fold is needed).
    q_scale = 1.0 / math.sqrt(hidden // num_heads)
    wqkv = normal(keys[5], (L, hidden, 3 * hidden))
    wqkv = wqkv.at[:, :, :hidden].multiply(q_scale)

    return dict(
        word_emb=normal(keys[0], (vocab, hidden)).at[0].set(0.0),   # padding_idx=0
        pos_emb=normal(keys[1], (maxlen, hidden)),
        type_emb=normal(keys[2], (1, hidden)),
        emb_ln_g=jnp.ones((hidden,), jnp.float32),
        emb_ln_b=jnp.zeros((hidden,), jnp.float32),
        user_w=bf(normal(keys[3], (user_emb_dim, hidden))),
        user_b=jnp.zeros((hidden,), jnp.float32),
        out_w=bf(normal(keys[4], (hidden, vocab))),
        out_b=jnp.zeros((vocab,), jnp.float32),
        layers=dict(   # stacked over a leading layer axis for the (B/Bt, L) grid
            wqkv=bf(wqkv),                                          # fused Q|K|V
            bqkv=jnp.zeros((L, 1, 3 * hidden), jnp.float32),
            wao=bf(normal(keys[6], (L, hidden, hidden))),
            bao=jnp.zeros((L, 1, hidden), jnp.float32),
            g1=jnp.ones((L, 1, hidden), jnp.float32),
            b1=jnp.zeros((L, 1, hidden), jnp.float32),
            wi=bf(normal(keys[7], (L, hidden, inter))),
            bi=jnp.zeros((L, 1, inter), jnp.float32),
            wfo=bf(normal(keys[8], (L, inter, hidden))),
            bfo=jnp.zeros((L, 1, hidden), jnp.float32),
            g2=jnp.ones((L, 1, hidden), jnp.float32),
            b2=jnp.zeros((L, 1, hidden), jnp.float32),
        ),
    )


# ----------------------------------- main --------------------------------------

if __name__ == "__main__":
    # small but representative config (vocab = 128 is lane-aligned)
    item_num, maxlen, hidden_units = 127, 8, 32
    num_heads, num_layers, user_emb_dim = 2, 2, 16
    batch = 2

    key = jax.random.PRNGKey(0)
    kp, ks, ku = jax.random.split(key, 3)
    params = init_params(kp, item_num, maxlen, hidden_units, num_layers,
                         num_heads, user_emb_dim)

    input_seq = jax.random.randint(ks, (batch, maxlen), 1, item_num + 1, dtype=jnp.int32)
    input_seq = input_seq.at[0, -2:].set(0)          # padding -> exercises attention mask
    user_profile_emb = jax.random.normal(ku, (batch, user_emb_dim), jnp.float32)

    forward = jax.jit(functools.partial(bert4rec_forward, num_heads=num_heads))
    logits = jax.block_until_ready(forward(params, input_seq, user_profile_emb))

    assert logits.shape == (batch, maxlen, item_num + 1), logits.shape
    assert bool(jnp.all(jnp.isfinite(logits.astype(jnp.float32))))
    print("KERNEL_OK")
</pallas_src>

<mosaic_0001>
module attributes {stable_mosaic.version = 11 : i64} {
  func.func @out_proj_kernel(%arg0: i32, %arg1: i32, %arg2: memref<16x32xbf16, #tpu.memory_space<vmem>>, %arg3: memref<32x128xbf16, #tpu.memory_space<vmem>>, %arg4: memref<1x128xf32, #tpu.memory_space<vmem>>, %arg5: memref<16x128xbf16, #tpu.memory_space<vmem>>) attributes {dimension_semantics = [#tpu.dimension_semantics<parallel>, #tpu.dimension_semantics<parallel>], iteration_bounds = array<i64: 1, 1>, scalar_prefetch = 0 : i64, scratch_operands = 0 : i64, tpu.core_type = #tpu.core_type<tc>, window_params = [{transform_indices = @transform_0, window_bounds = array<i64: 16, 32>}, {transform_indices = @transform_1, window_bounds = array<i64: 32, 128>}, {transform_indices = @transform_2, window_bounds = array<i64: 1, 128>}, {transform_indices = @transform_3, window_bounds = array<i64: 16, 128>}]} {
    %c0 = arith.constant 0 : index
    %c0_0 = arith.constant 0 : index
    %0 = vector.load %arg2[%c0, %c0_0] : memref<16x32xbf16, #tpu.memory_space<vmem>>, vector<16x32xbf16>
    %c0_1 = arith.constant 0 : index
    %c0_2 = arith.constant 0 : index
    %1 = vector.load %arg3[%c0_1, %c0_2] : memref<32x128xbf16, #tpu.memory_space<vmem>>, vector<32x128xbf16>
    %cst = arith.constant dense<0.000000e+00> : vector<16x128xf32>
    %2 = tpu.matmul %0, %1, %cst {dimension_numbers = #tpu.dot_dimension_numbers<[1], [0], [0], [1], [0, 0, 1, 1], [], []>} : vector<16x32xbf16>, vector<32x128xbf16>, vector<16x128xf32> -> vector<16x128xf32>
    %c0_3 = arith.constant 0 : index
    %c0_4 = arith.constant 0 : index
    %3 = vector.load %arg4[%c0_3, %c0_4] : memref<1x128xf32, #tpu.memory_space<vmem>>, vector<1x128xf32>
    %4 = vector.broadcast %3 : vector<1x128xf32> to vector<16x128xf32>
    %5 = arith.addf %2, %4 : vector<16x128xf32>
    %6 = arith.truncf %5 : vector<16x128xf32> to vector<16x128xbf16>
    %c0_5 = arith.constant 0 : index
    %c0_6 = arith.constant 0 : index
    %7 = vector.load %arg5[%c0_5, %c0_6] : memref<16x128xbf16, #tpu.memory_space<vmem>>, vector<16x128xbf16>
    tpu.vector_store %arg5[%c0_5, %c0_6], %6 {strides = array<i32>} : memref<16x128xbf16, #tpu.memory_space<vmem>>, vector<16x128xbf16>,
    return
  }
  func.func @transform_0(%arg0: i32, %arg1: i32) -> (i32, i32) {
    %c0_i32 = arith.constant 0 : i32
    %c0_i32_0 = arith.constant 0 : i32
    return %arg1, %c0_i32 : i32, i32
  }
  func.func @transform_1(%arg0: i32, %arg1: i32) -> (i32, i32) {
    %c0_i32 = arith.constant 0 : i32
    %c0_i32_0 = arith.constant 0 : i32
    return %c0_i32, %arg0 : i32, i32
  }
  func.func @transform_2(%arg0: i32, %arg1: i32) -> (i32, i32) {
    %c0_i32 = arith.constant 0 : i32
    %c0_i32_0 = arith.constant 0 : i32
    return %c0_i32, %arg0 : i32, i32
  }
  func.func @transform_3(%arg0: i32, %arg1: i32) -> (i32, i32) {
    %c0_i32 = arith.constant 0 : i32
    return %arg1, %arg0 : i32, i32
  }
}

module attributes {stable_mosaic.version = 11 : i64} {
  func.func @user_proj_kernel(%arg0: i32, %arg1: memref<2x16xf32, #tpu.memory_space<vmem>>, %arg2: memref<16x32xbf16, #tpu.memory_space<vmem>>, %arg3: memref<1x32xf32, #tpu.memory_space<vmem>>, %arg4: memref<2x32xf32, #tpu.memory_space<vmem>>) attributes {dimension_semantics = [#tpu.dimension_semantics<arbitrary>], iteration_bounds = array<i64: 1>, scalar_prefetch = 0 : i64, scratch_operands = 0 : i64, tpu.core_type = #tpu.core_type<tc>, window_params = [{pipeline_mode = #tpu.pipeline_mode<synchronous>, transform_indices = @transform_0, window_bounds = array<i64: 2, 16>}, {pipeline_mode = #tpu.pipeline_mode<synchronous>, transform_indices = @transform_1, window_bounds = array<i64: 16, 32>}, {pipeline_mode = #tpu.pipeline_mode<synchronous>, transform_indices = @transform_2, window_bounds = array<i64: 1, 32>}, {pipeline_mode = #tpu.pipeline_mode<synchronous>, transform_indices = @transform_3, window_bounds = array<i64: 2, 32>}]} {
    %c0 = arith.constant 0 : index
    %c0_0 = arith.constant 0 : index
    %0 = vector.load %arg1[%c0, %c0_0] : memref<2x16xf32, #tpu.memory_space<vmem>>, vector<2x16xf32>
    %1 = arith.truncf %0 : vector<2x16xf32> to vector<2x16xbf16>
    %c0_1 = arith.constant 0 : index
    %c0_2 = arith.constant 0 : index
    %2 = vector.load %arg2[%c0_1, %c0_2] : memref<16x32xbf16, #tpu.memory_space<vmem>>, vector<16x32xbf16>
    %cst = arith.constant dense<0.000000e+00> : vector<2x32xf32>
    %3 = tpu.matmul %1, %2, %cst {dimension_numbers = #tpu.dot_dimension_numbers<[1], [0], [0], [1], [0, 0, 1, 1], [], []>} : vector<2x16xbf16>, vector<16x32xbf16>, vector<2x32xf32> -> vector<2x32xf32>
    %c0_3 = arith.constant 0 : index
    %c0_4 = arith.constant 0 : index
    %4 = vector.load %arg3[%c0_3, %c0_4] : memref<1x32xf32, #tpu.memory_space<vmem>>, vector<1x32xf32>
    %5 = vector.broadcast %4 : vector<1x32xf32> to vector<2x32xf32>
    %6 = arith.addf %3, %5 : vector<2x32xf32>
    %c0_5 = arith.constant 0 : index
    %c0_6 = arith.constant 0 : index
    %7 = vector.load %arg4[%c0_5, %c0_6] : memref<2x32xf32, #tpu.memory_space<vmem>>, vector<2x32xf32>
    tpu.vector_store %arg4[%c0_5, %c0_6], %6 {strides = array<i32>} : memref<2x32xf32, #tpu.memory_space<vmem>>, vector<2x32xf32>,
    return
  }
  func.func @transform_0(%arg0: i32) -> (i32, i32) {
    %c0_i32 = arith.constant 0 : i32
    %c0_i32_0 = arith.constant 0 : i32
    %c0_i32_1 = arith.constant 0 : i32
    return %c0_i32, %c0_i32_0 : i32, i32
  }
  func.func @transform_1(%arg0: i32) -> (i32, i32) {
    %c0_i32 = arith.constant 0 : i32
    %c0_i32_0 = arith.constant 0 : i32
    %c0_i32_1 = arith.constant 0 : i32
    return %c0_i32, %c0_i32_0 : i32, i32
  }
  func.func @transform_2(%arg0: i32) -> (i32, i32) {
    %c0_i32 = arith.constant 0 : i32
    %c0_i32_0 = arith.constant 0 : i32
    %c0_i32_1 = arith.constant 0 : i32
    return %c0_i32, %c0_i32_0 : i32, i32
  }
  func.func @transform_3(%arg0: i32) -> (i32, i32) {
    %c0_i32 = arith.constant 0 : i32
    %c0_i32_0 = arith.constant 0 : i32
    %c0_i32_1 = arith.constant 0 : i32
    return %c0_i32, %c0_i32_0 : i32, i32
  }
}

module attributes {stable_mosaic.version = 11 : i64} {
  func.func @embed_kernel(%arg0: i32, %arg1: memref<1x8x32xf32, #tpu.memory_space<vmem>>, %arg2: memref<8x32xf32, #tpu.memory_space<vmem>>, %arg3: memref<1x32xf32, #tpu.memory_space<vmem>>, %arg4: memref<1x1x32xf32, #tpu.memory_space<vmem>>, %arg5: memref<1x32xf32, #tpu.memory_space<vmem>>, %arg6: memref<1x32xf32, #tpu.memory_space<vmem>>, %arg7: memref<1x8x32xf32, #tpu.memory_space<vmem>>) attributes {dimension_semantics = [#tpu.dimension_semantics<parallel>], iteration_bounds = array<i64: 2>, scalar_prefetch = 0 : i64, scratch_operands = 0 : i64, tpu.core_type = #tpu.core_type<tc>, window_params = [{transform_indices = @transform_0, window_bounds = array<i64: 1, 8, 32>}, {pipeline_mode = #tpu.pipeline_mode<synchronous>, transform_indices = @transform_1, window_bounds = array<i64: 8, 32>}, {pipeline_mode = #tpu.pipeline_mode<synchronous>, transform_indices = @transform_2, window_bounds = array<i64: 1, 32>}, {transform_indices = @transform_3, window_bounds = array<i64: 1, 1, 32>}, {pipeline_mode = #tpu.pipeline_mode<synchronous>, transform_indices = @transform_4, window_bounds = array<i64: 1, 32>}, {pipeline_mode = #tpu.pipeline_mode<synchronous>, transform_indices = @transform_5, window_bounds = array<i64: 1, 32>}, {transform_indices = @transform_6, window_bounds = array<i64: 1, 8, 32>}]} {
    %c0 = arith.constant 0 : index
    %c0_0 = arith.constant 0 : index
    %c0_1 = arith.constant 0 : index
    %0 = vector.load %arg1[%c0, %c0_0, %c0_1] : memref<1x8x32xf32, #tpu.memory_space<vmem>>, vector<1x8x32xf32>
    %1 = vector.shape_cast %0 : vector<1x8x32xf32> to vector<8x32xf32>
    %c0_2 = arith.constant 0 : index
    %c0_3 = arith.constant 0 : index
    %2 = vector.load %arg2[%c0_2, %c0_3] : memref<8x32xf32, #tpu.memory_space<vmem>>, vector<8x32xf32>
    %c0_4 = arith.constant 0 : index
    %c0_5 = arith.constant 0 : index
    %3 = vector.load %arg3[%c0_4, %c0_5] : memref<1x32xf32, #tpu.memory_space<vmem>>, vector<1x32xf32>
    %c0_6 = arith.constant 0 : index
    %c0_7 = arith.constant 0 : index
    %4 = vector.load %arg5[%c0_6, %c0_7] : memref<1x32xf32, #tpu.memory_space<vmem>>, vector<1x32xf32>
    %c0_8 = arith.constant 0 : index
    %c0_9 = arith.constant 0 : index
    %5 = vector.load %arg6[%c0_8, %c0_9] : memref<1x32xf32, #tpu.memory_space<vmem>>, vector<1x32xf32>
    %6 = arith.addf %1, %2 : vector<8x32xf32>
    %7 = vector.broadcast %3 : vector<1x32xf32> to vector<8x32xf32>
    %8 = arith.addf %6, %7 : vector<8x32xf32>
    %cst = arith.constant dense<0.000000e+00> : vector<8xf32>
    %9 = vector.multi_reduction <add>, %8, %cst [1] : vector<8x32xf32> to vector<8xf32>
    %10 = vector.shape_cast %9 : vector<8xf32> to vector<8x1xf32>
    %cst_10 = arith.constant 3.200000e+01 : f32
    %11 = vector.broadcast %cst_10 : f32 to vector<8x1xf32>
    %12 = arith.divf %10, %11 : vector<8x1xf32>
    %13 = vector.broadcast %12 : vector<8x1xf32> to vector<8x32xf32>
    %14 = arith.subf %8, %13 : vector<8x32xf32>
    %15 = arith.mulf %14, %14 : vector<8x32xf32>
    %cst_11 = arith.constant dense<0.000000e+00> : vector<8xf32>
    %16 = vector.multi_reduction <add>, %15, %cst_11 [1] : vector<8x32xf32> to vector<8xf32>
    %17 = vector.shape_cast %16 : vector<8xf32> to vector<8x1xf32>
    %cst_12 = arith.constant 3.200000e+01 : f32
    %18 = vector.broadcast %cst_12 : f32 to vector<8x1xf32>
    %19 = arith.divf %17, %18 : vector<8x1xf32>
    %20 = vector.broadcast %12 : vector<8x1xf32> to vector<8x32xf32>
    %21 = arith.subf %8, %20 : vector<8x32xf32>
    %cst_13 = arith.constant 9.99999996E-13 : f32
    %22 = vector.broadcast %cst_13 : f32 to vector<8x1xf32>
    %23 = arith.addf %19, %22 : vector<8x1xf32>
    %24 = math.rsqrt %23 : vector<8x1xf32>
    %25 = vector.broadcast %24 : vector<8x1xf32> to vector<8x32xf32>
    %26 = arith.mulf %21, %25 : vector<8x32xf32>
    %27 = vector.broadcast %4 : vector<1x32xf32> to vector<8x32xf32>
    %28 = arith.mulf %26, %27 : vector<8x32xf32>
    %29 = vector.broadcast %5 : vector<1x32xf32> to vector<8x32xf32>
    %30 = arith.addf %28, %29 : vector<8x32xf32>
    %c0_14 = arith.constant 0 : index
    %c0_15 = arith.constant 0 : index
    %c0_16 = arith.constant 0 : index
    %31 = vector.load %arg4[%c0_14, %c0_15, %c0_16] : memref<1x1x32xf32, #tpu.memory_space<vmem>>, vector<1x1x32xf32>
    %32 = vector.shape_cast %31 : vector<1x1x32xf32> to vector<1x32xf32>
    %33 = vector.broadcast %32 : vector<1x32xf32> to vector<8x32xf32>
    %34 = arith.addf %30, %33 : vector<8x32xf32>
    %35 = arith.addf %34, %2 : vector<8x32xf32>
    %36 = vector.broadcast %3 : vector<1x32xf32> to vector<8x32xf32>
    %37 = arith.addf %35, %36 : vector<8x32xf32>
    %cst_17 = arith.constant dense<0.000000e+00> : vector<8xf32>
    %38 = vector.multi_reduction <add>, %37, %cst_17 [1] : vector<8x32xf32> to vector<8xf32>
    %39 = vector.shape_cast %38 : vector<8xf32> to vector<8x1xf32>
    %cst_18 = arith.constant 3.200000e+01 : f32
    %40 = vector.broadcast %cst_18 : f32 to vector<8x1xf32>
    %41 = arith.divf %39, %40 : vector<8x1xf32>
    %42 = vector.broadcast %41 : vector<8x1xf32> to vector<8x32xf32>
    %43 = arith.subf %37, %42 : vector<8x32xf32>
    %44 = arith.mulf %43, %43 : vector<8x32xf32>
    %cst_19 = arith.constant dense<0.000000e+00> : vector<8xf32>
    %45 = vector.multi_reduction <add>, %44, %cst_19 [1] : vector<8x32xf32> to vector<8xf32>
    %46 = vector.shape_cast %45 : vector<8xf32> to vector<8x1xf32>
    %cst_20 = arith.constant 3.200000e+01 : f32
    %47 = vector.broadcast %cst_20 : f32 to vector<8x1xf32>
    %48 = arith.divf %46, %47 : vector<8x1xf32>
    %49 = vector.broadcast %41 : vector<8x1xf32> to vector<8x32xf32>
    %50 = arith.subf %37, %49 : vector<8x32xf32>
    %cst_21 = arith.constant 9.99999996E-13 : f32
    %51 = vector.broadcast %cst_21 : f32 to vector<8x1xf32>
    %52 = arith.addf %48, %51 : vector<8x1xf32>
    %53 = math.rsqrt %52 : vector<8x1xf32>
    %54 = vector.broadcast %53 : vector<8x1xf32> to vector<8x32xf32>
    %55 = arith.mulf %50, %54 : vector<8x32xf32>
    %56 = vector.broadcast %4 : vector<1x32xf32> to vector<8x32xf32>
    %57 = arith.mulf %55, %56 : vector<8x32xf32>
    %58 = vector.broadcast %5 : vector<1x32xf32> to vector<8x32xf32>
    %59 = arith.addf %57, %58 : vector<8x32xf32>
    %c0_22 = arith.constant 0 : index
    %c0_23 = arith.constant 0 : index
    %c0_24 = arith.constant 0 : index
    %60 = vector.load %arg7[%c0_22, %c0_23, %c0_24] : memref<1x8x32xf32, #tpu.memory_space<vmem>>, vector<1x8x32xf32>
    %61 = vector.shape_cast %60 : vector<1x8x32xf32> to vector<8x32xf32>
    %62 = vector.shape_cast %59 : vector<8x32xf32> to vector<1x8x32xf32>
    tpu.vector_store %arg7[%c0_22, %c0_23, %c0_24], %62 {strides = array<i32>} : memref<1x8x32xf32, #tpu.memory_space<vmem>>, vector<1x8x32xf32>,
    return
  }
  func.func @transform_0(%arg0: i32) -> (i32, i32, i32) {
    %c0_i32 = arith.constant 0 : i32
    %c0_i32_0 = arith.constant 0 : i32
    %c0_i32_1 = arith.constant 0 : i32
    return %arg0, %c0_i32, %c0_i32_0 : i32, i32, i32
  }
  func.func @transform_1(%arg0: i32) -> (i32, i32) {
    %c0_i32 = arith.constant 0 : i32
    %c0_i32_0 = arith.constant 0 : i32
    %c0_i32_1 = arith.constant 0 : i32
    return %c0_i32, %c0_i32_0 : i32, i32
  }
  func.func @transform_2(%arg0: i32) -> (i32, i32) {
    %c0_i32 = arith.constant 0 : i32
    %c0_i32_0 = arith.constant 0 : i32
    %c0_i32_1 = arith.constant 0 : i32
    return %c0_i32, %c0_i32_0 : i32, i32
  }
  func.func @transform_3(%arg0: i32) -> (i32, i32, i32) {
    %c0_i32 = arith.constant 0 : i32
    %c0_i32_0 = arith.constant 0 : i32
    %c0_i32_1 = arith.constant 0 : i32
    return %arg0, %c0_i32, %c0_i32_0 : i32, i32, i32
  }
  func.func @transform_4(%arg0: i32) -> (i32, i32) {
    %c0_i32 = arith.constant 0 : i32
    %c0_i32_0 = arith.constant 0 : i32
    %c0_i32_1 = arith.constant 0 : i32
    return %c0_i32, %c0_i32_0 : i32, i32
  }
  func.func @transform_5(%arg0: i32) -> (i32, i32) {
    %c0_i32 = arith.constant 0 : i32
    %c0_i32_0 = arith.constant 0 : i32
    %c0_i32_1 = arith.constant 0 : i32
    return %c0_i32, %c0_i32_0 : i32, i32
  }
  func.func @transform_6(%arg0: i32) -> (i32, i32, i32) {
    %c0_i32 = arith.constant 0 : i32
    %c0_i32_0 = arith.constant 0 : i32
    %c0_i32_1 = arith.constant 0 : i32
    return %arg0, %c0_i32, %c0_i32_0 : i32, i32, i32
  }
}

module attributes {stable_mosaic.version = 11 : i64} {
  func.func @encoder_stack_kernel(%arg0: i32, %arg1: i32, %arg2: memref<16x32xf32, #tpu.memory_space<vmem>>, %arg3: memref<2x1x8xf32, #tpu.memory_space<vmem>>, %arg4: memref<1x32x96xbf16, #tpu.memory_space<vmem>>, %arg5: memref<1x1x96xf32, #tpu.memory_space<vmem>>, %arg6: memref<1x32x32xbf16, #tpu.memory_space<vmem>>, %arg7: memref<1x1x32xf32, #tpu.memory_space<vmem>>, %arg8: memref<1x1x32xf32, #tpu.memory_space<vmem>>, %arg9: memref<1x1x32xf32, #tpu.memory_space<vmem>>, %arg10: memref<1x32x128xbf16, #tpu.memory_space<vmem>>, %arg11: memref<1x1x128xf32, #tpu.memory_space<vmem>>, %arg12: memref<1x128x32xbf16, #tpu.memory_space<vmem>>, %arg13: memref<1x1x32xf32, #tpu.memory_space<vmem>>, %arg14: memref<1x1x32xf32, #tpu.memory_space<vmem>>, %arg15: memref<1x1x32xf32, #tpu.memory_space<vmem>>, %arg16: memref<16x32xbf16, #tpu.memory_space<vmem>>, %arg17: memref<16x32xf32, #tpu.memory_space<vmem>>, %arg18: memref<16x32xbf16, #tpu.memory_space<vmem>>) attributes {dimension_semantics = [#tpu.dimension_semantics<parallel>, #tpu.dimension_semantics<arbitrary>], iteration_bounds = array<i64: 1, 2>, scalar_prefetch = 0 : i64, scratch_operands = 2 : i64, tpu.core_type = #tpu.core_type<tc>, window_params = [{transform_indices = @transform_0, window_bounds = array<i64: 16, 32>}, {transform_indices = @transform_1, window_bounds = array<i64: 2, 1, 8>}, {transform_indices = @transform_2, window_bounds = array<i64: 1, 32, 96>}, {transform_indices = @transform_3, window_bounds = array<i64: 1, 1, 96>}, {transform_indices = @transform_4, window_bounds = array<i64: 1, 32, 32>}, {transform_indices = @transform_5, window_bounds = array<i64: 1, 1, 32>}, {transform_indices = @transform_6, window_bounds = array<i64: 1, 1, 32>}, {transform_indices = @transform_7, window_bounds = array<i64: 1, 1, 32>}, {transform_indices = @transform_8, window_bounds = array<i64: 1, 32, 128>}, {transform_indices = @transform_9, window_bounds = array<i64: 1, 1, 128>}, {transform_indices = @transform_10, window_bounds = array<i64: 1, 128, 32>}, {transform_indices = @transform_11, window_bounds = array<i64: 1, 1, 32>}, {transform_indices = @transform_12, window_bounds = array<i64: 1, 1, 32>}, {transform_indices = @transform_13, window_bounds = array<i64: 1, 1, 32>}, {transform_indices = @transform_14, window_bounds = array<i64: 16, 32>}]} {
    %c0_i32 = arith.constant 0 : i32
    %0 = arith.cmpi eq, %arg1, %c0_i32 : i32
    %1 = arith.extui %0 : i1 to i32
    %c0_i32_0 = arith.constant 0 : i32
    %2 = arith.cmpi ne, %1, %c0_i32_0 : i32
    scf.if %2 {
      %c0_86 = arith.constant 0 : index
      %c0_87 = arith.constant 0 : index
      %185 = vector.load %arg2[%c0_86, %c0_87] : memref<16x32xf32, #tpu.memory_space<vmem>>, vector<16x32xf32>
      %c0_88 = arith.constant 0 : index
      %c0_89 = arith.constant 0 : index
      %186 = vector.load %arg17[%c0_88, %c0_89] : memref<16x32xf32, #tpu.memory_space<vmem>>, vector<16x32xf32>
      tpu.vector_store %arg17[%c0_88, %c0_89], %185 {strides = array<i32>} : memref<16x32xf32, #tpu.memory_space<vmem>>, vector<16x32xf32>,
    } else {
    }
    %c0 = arith.constant 0 : index
    %c0_1 = arith.constant 0 : index
    %3 = vector.load %arg17[%c0, %c0_1] : memref<16x32xf32, #tpu.memory_space<vmem>>, vector<16x32xf32>
    %c0_2 = arith.constant 0 : index
    %c0_3 = arith.constant 0 : index
    %c0_4 = arith.constant 0 : index
    %4 = vector.load %arg3[%c0_2, %c0_3, %c0_4] : memref<2x1x8xf32, #tpu.memory_space<vmem>>, vector<2x1x8xf32>
    %5 = arith.truncf %3 : vector<16x32xf32> to vector<16x32xbf16>
    %c0_5 = arith.constant 0 : index
    %c0_6 = arith.constant 0 : index
    %c0_7 = arith.constant 0 : index
    %6 = vector.load %arg4[%c0_5, %c0_6, %c0_7] : memref<1x32x96xbf16, #tpu.memory_space<vmem>>, vector<1x32x96xbf16>
    %7 = vector.shape_cast %6 : vector<1x32x96xbf16> to vector<32x96xbf16>
    %cst = arith.constant dense<0.000000e+00> : vector<16x96xf32>
    %8 = tpu.matmul %5, %7, %cst {dimension_numbers = #tpu.dot_dimension_numbers<[1], [0], [0], [1], [0, 0, 1, 1], [], []>} : vector<16x32xbf16>, vector<32x96xbf16>, vector<16x96xf32> -> vector<16x96xf32>
    %c0_8 = arith.constant 0 : index
    %c0_9 = arith.constant 0 : index
    %c0_10 = arith.constant 0 : index
    %9 = vector.load %arg5[%c0_8, %c0_9, %c0_10] : memref<1x1x96xf32, #tpu.memory_space<vmem>>, vector<1x1x96xf32>
    %10 = vector.shape_cast %9 : vector<1x1x96xf32> to vector<1x96xf32>
    %11 = vector.broadcast %10 : vector<1x96xf32> to vector<16x96xf32>
    %12 = arith.addf %8, %11 : vector<16x96xf32>
    %13 = arith.truncf %12 : vector<16x96xf32> to vector<16x96xbf16>
    %14 = vector.extract_strided_slice %13 {offsets = [0, 0], sizes = [16, 32], strides = [1, 1]} : vector<16x96xbf16> to vector<16x32xbf16>
    %15 = vector.shape_cast %14 : vector<16x32xbf16> to vector<2x8x32xbf16>
    %16 = vector.extract_strided_slice %13 {offsets = [0, 32], sizes = [16, 32], strides = [1, 1]} : vector<16x96xbf16> to vector<16x32xbf16>
    %17 = vector.shape_cast %16 : vector<16x32xbf16> to vector<2x8x32xbf16>
    %18 = vector.extract_strided_slice %13 {offsets = [0, 64], sizes = [16, 32], strides = [1, 1]} : vector<16x96xbf16> to vector<16x32xbf16>
    %19 = vector.shape_cast %18 : vector<16x32xbf16> to vector<2x8x32xbf16>
    %20 = vector.extract_strided_slice %15 {offsets = [0, 0, 0], sizes = [2, 8, 16], strides = [1, 1, 1]} : vector<2x8x32xbf16> to vector<2x8x16xbf16>
    %21 = vector.extract_strided_slice %17 {offsets = [0, 0, 0], sizes = [2, 8, 16], strides = [1, 1, 1]} : vector<2x8x32xbf16> to vector<2x8x16xbf16>
    %22 = vector.extract_strided_slice %19 {offsets = [0, 0, 0], sizes = [2, 8, 16], strides = [1, 1, 1]} : vector<2x8x32xbf16> to vector<2x8x16xbf16>
    %cst_11 = arith.constant dense<0.000000e+00> : vector<2x8x8xf32>
    %23 = tpu.matmul %20, %21, %cst_11 {dimension_numbers = #tpu.dot_dimension_numbers<[2], [2], [1], [1], [0, 0, 0, 1, 1, 1], [0], [0]>} : vector<2x8x16xbf16>, vector<2x8x16xbf16>, vector<2x8x8xf32> -> vector<2x8x8xf32>
    %24 = vector.broadcast %4 : vector<2x1x8xf32> to vector<2x8x8xf32>
    %25 = arith.addf %23, %24 : vector<2x8x8xf32>
    %cst_12 = arith.constant dense<0xFF800000> : vector<2x8xf32>
    %26 = vector.multi_reduction <maximumf>, %25, %cst_12 [2] : vector<2x8x8xf32> to vector<2x8xf32>
    %27 = vector.shape_cast %26 : vector<2x8xf32> to vector<2x8x1xf32>
    %28 = vector.broadcast %27 : vector<2x8x1xf32> to vector<2x8x8xf32>
    %29 = arith.subf %25, %28 : vector<2x8x8xf32>
    %30 = math.exp %29 : vector<2x8x8xf32>
    %cst_13 = arith.constant dense<0.000000e+00> : vector<2x8xf32>
    %31 = vector.multi_reduction <add>, %30, %cst_13 [2] : vector<2x8x8xf32> to vector<2x8xf32>
    %32 = vector.shape_cast %31 : vector<2x8xf32> to vector<2x8x1xf32>
    %33 = tpu.reciprocal %32 {approx = true} : vector<2x8x1xf32> -> vector<2x8x1xf32>
    %34 = vector.broadcast %33 : vector<2x8x1xf32> to vector<2x8x8xf32>
    %35 = arith.mulf %30, %34 : vector<2x8x8xf32>
    %36 = arith.truncf %35 : vector<2x8x8xf32> to vector<2x8x8xbf16>
    %cst_14 = arith.constant dense<0.000000e+00> : vector<2x8x16xf32>
    %37 = tpu.matmul %36, %22, %cst_14 {dimension_numbers = #tpu.dot_dimension_numbers<[2], [1], [1], [2], [0, 0, 0, 1, 1, 2], [0], [0]>} : vector<2x8x8xbf16>, vector<2x8x16xbf16>, vector<2x8x16xf32> -> vector<2x8x16xf32>
    %38 = vector.shape_cast %37 : vector<2x8x16xf32> to vector<16x16xf32>
    %39 = arith.truncf %38 : vector<16x16xf32> to vector<16x16xbf16>
    %c0_15 = arith.constant 0 : index
    %c0_16 = arith.constant 0 : index
    %40 = vector.load %arg18[%c0_15, %c0_16] : memref<16x32xbf16, #tpu.memory_space<vmem>>, vector<16x16xbf16>
    tpu.vector_store %arg18[%c0_15, %c0_16], %39 {strides = array<i32>} : memref<16x32xbf16, #tpu.memory_space<vmem>>, vector<16x16xbf16>,
    %41 = vector.extract_strided_slice %15 {offsets = [0, 0, 16], sizes = [2, 8, 16], strides = [1, 1, 1]} : vector<2x8x32xbf16> to vector<2x8x16xbf16>
    %42 = vector.extract_strided_slice %17 {offsets = [0, 0, 16], sizes = [2, 8, 16], strides = [1, 1, 1]} : vector<2x8x32xbf16> to vector<2x8x16xbf16>
    %43 = vector.extract_strided_slice %19 {offsets = [0, 0, 16], sizes = [2, 8, 16], strides = [1, 1, 1]} : vector<2x8x32xbf16> to vector<2x8x16xbf16>
    %cst_17 = arith.constant dense<0.000000e+00> : vector<2x8x8xf32>
    %44 = tpu.matmul %41, %42, %cst_17 {dimension_numbers = #tpu.dot_dimension_numbers<[2], [2], [1], [1], [0, 0, 0, 1, 1, 1], [0], [0]>} : vector<2x8x16xbf16>, vector<2x8x16xbf16>, vector<2x8x8xf32> -> vector<2x8x8xf32>
    %45 = vector.broadcast %4 : vector<2x1x8xf32> to vector<2x8x8xf32>
    %46 = arith.addf %44, %45 : vector<2x8x8xf32>
    %cst_18 = arith.constant dense<0xFF800000> : vector<2x8xf32>
    %47 = vector.multi_reduction <maximumf>, %46, %cst_18 [2] : vector<2x8x8xf32> to vector<2x8xf32>
    %48 = vector.shape_cast %47 : vector<2x8xf32> to vector<2x8x1xf32>
    %49 = vector.broadcast %48 : vector<2x8x1xf32> to vector<2x8x8xf32>
    %50 = arith.subf %46, %49 : vector<2x8x8xf32>
    %51 = math.exp %50 : vector<2x8x8xf32>
    %cst_19 = arith.constant dense<0.000000e+00> : vector<2x8xf32>
    %52 = vector.multi_reduction <add>, %51, %cst_19 [2] : vector<2x8x8xf32> to vector<2x8xf32>
    %53 = vector.shape_cast %52 : vector<2x8xf32> to vector<2x8x1xf32>
    %54 = tpu.reciprocal %53 {approx = true} : vector<2x8x1xf32> -> vector<2x8x1xf32>
    %55 = vector.broadcast %54 : vector<2x8x1xf32> to vector<2x8x8xf32>
    %56 = arith.mulf %51, %55 : vector<2x8x8xf32>
    %57 = arith.truncf %56 : vector<2x8x8xf32> to vector<2x8x8xbf16>
    %cst_20 = arith.constant dense<0.000000e+00> : vector<2x8x16xf32>
    %58 = tpu.matmul %57, %43, %cst_20 {dimension_numbers = #tpu.dot_dimension_numbers<[2], [1], [1], [2], [0, 0, 0, 1, 1, 2], [0], [0]>} : vector<2x8x8xbf16>, vector<2x8x16xbf16>, vector<2x8x16xf32> -> vector<2x8x16xf32>
    %59 = vector.shape_cast %58 : vector<2x8x16xf32> to vector<16x16xf32>
    %60 = arith.truncf %59 : vector<16x16xf32> to vector<16x16xbf16>
    %c0_21 = arith.constant 0 : index
    %c16 = arith.constant 16 : index
    %61 = vector.load %arg18[%c0_21, %c16] : memref<16x32xbf16, #tpu.memory_space<vmem>>, vector<16x16xbf16>
    tpu.vector_store %arg18[%c0_21, %c16], %60 {strides = array<i32>} : memref<16x32xbf16, #tpu.memory_space<vmem>>, vector<16x16xbf16>,
    %c0_22 = arith.constant 0 : index
    %c0_23 = arith.constant 0 : index
    %62 = vector.load %arg18[%c0_22, %c0_23] : memref<16x32xbf16, #tpu.memory_space<vmem>>, vector<16x32xbf16>
    %c0_24 = arith.constant 0 : index
    %c0_25 = arith.constant 0 : index
    %c0_26 = arith.constant 0 : index
    %63 = vector.load %arg6[%c0_24, %c0_25, %c0_26] : memref<1x32x32xbf16, #tpu.memory_space<vmem>>, vector<1x32x32xbf16>
    %64 = vector.shape_cast %63 : vector<1x32x32xbf16> to vector<32x32xbf16>
    %cst_27 = arith.constant dense<0.000000e+00> : vector<16x32xf32>
    %65 = tpu.matmul %62, %64, %cst_27 {dimension_numbers = #tpu.dot_dimension_numbers<[1], [0], [0], [1], [0, 0, 1, 1], [], []>} : vector<16x32xbf16>, vector<32x32xbf16>, vector<16x32xf32> -> vector<16x32xf32>
    %c0_28 = arith.constant 0 : index
    %c0_29 = arith.constant 0 : index
    %c0_30 = arith.constant 0 : index
    %66 = vector.load %arg7[%c0_28, %c0_29, %c0_30] : memref<1x1x32xf32, #tpu.memory_space<vmem>>, vector<1x1x32xf32>
    %67 = vector.shape_cast %66 : vector<1x1x32xf32> to vector<1x32xf32>
    %68 = vector.broadcast %67 : vector<1x32xf32> to vector<16x32xf32>
    %69 = arith.addf %65, %68 : vector<16x32xf32>
    %70 = arith.addf %3, %69 : vector<16x32xf32>
    %c0_31 = arith.constant 0 : index
    %c0_32 = arith.constant 0 : index
    %c0_33 = arith.constant 0 : index
    %71 = vector.load %arg8[%c0_31, %c0_32, %c0_33] : memref<1x1x32xf32, #tpu.memory_space<vmem>>, vector<1x1x32xf32>
    %72 = vector.shape_cast %71 : vector<1x1x32xf32> to vector<1x32xf32>
    %c0_34 = arith.constant 0 : index
    %c0_35 = arith.constant 0 : index
    %c0_36 = arith.constant 0 : index
    %73 = vector.load %arg9[%c0_34, %c0_35, %c0_36] : memref<1x1x32xf32, #tpu.memory_space<vmem>>, vector<1x1x32xf32>
    %74 = vector.shape_cast %73 : vector<1x1x32xf32> to vector<1x32xf32>
    %cst_37 = arith.constant dense<0.000000e+00> : vector<16xf32>
    %75 = vector.multi_reduction <add>, %70, %cst_37 [1] : vector<16x32xf32> to vector<16xf32>
    %76 = vector.shape_cast %75 : vector<16xf32> to vector<16x1xf32>
    %cst_38 = arith.constant 3.200000e+01 : f32
    %77 = vector.broadcast %cst_38 : f32 to vector<16x1xf32>
    %78 = arith.divf %76, %77 : vector<16x1xf32>
    %79 = vector.broadcast %78 : vector<16x1xf32> to vector<16x32xf32>
    %80 = arith.subf %70, %79 : vector<16x32xf32>
    %81 = arith.mulf %80, %80 : vector<16x32xf32>
    %cst_39 = arith.constant dense<0.000000e+00> : vector<16xf32>
    %82 = vector.multi_reduction <add>, %81, %cst_39 [1] : vector<16x32xf32> to vector<16xf32>
    %83 = vector.shape_cast %82 : vector<16xf32> to vector<16x1xf32>
    %cst_40 = arith.constant 3.200000e+01 : f32
    %84 = vector.broadcast %cst_40 : f32 to vector<16x1xf32>
    %85 = arith.divf %83, %84 : vector<16x1xf32>
    %86 = vector.broadcast %78 : vector<16x1xf32> to vector<16x32xf32>
    %87 = arith.subf %70, %86 : vector<16x32xf32>
    %cst_41 = arith.constant 9.99999996E-13 : f32
    %88 = vector.broadcast %cst_41 : f32 to vector<16x1xf32>
    %89 = arith.addf %85, %88 : vector<16x1xf32>
    %90 = math.rsqrt %89 : vector<16x1xf32>
    %91 = vector.broadcast %90 : vector<16x1xf32> to vector<16x32xf32>
    %92 = arith.mulf %87, %91 : vector<16x32xf32>
    %93 = vector.broadcast %72 : vector<1x32xf32> to vector<16x32xf32>
    %94 = arith.mulf %92, %93 : vector<16x32xf32>
    %95 = vector.broadcast %74 : vector<1x32xf32> to vector<16x32xf32>
    %96 = arith.addf %94, %95 : vector<16x32xf32>
    %97 = arith.truncf %96 : vector<16x32xf32> to vector<16x32xbf16>
    %c0_42 = arith.constant 0 : index
    %c0_43 = arith.constant 0 : index
    %c0_44 = arith.constant 0 : index
    %98 = vector.load %arg10[%c0_42, %c0_43, %c0_44] : memref<1x32x128xbf16, #tpu.memory_space<vmem>>, vector<1x32x128xbf16>
    %99 = vector.shape_cast %98 : vector<1x32x128xbf16> to vector<32x128xbf16>
    %cst_45 = arith.constant dense<0.000000e+00> : vector<16x128xf32>
    %100 = tpu.matmul %97, %99, %cst_45 {dimension_numbers = #tpu.dot_dimension_numbers<[1], [0], [0], [1], [0, 0, 1, 1], [], []>} : vector<16x32xbf16>, vector<32x128xbf16>, vector<16x128xf32> -> vector<16x128xf32>
    %c0_46 = arith.constant 0 : index
    %c0_47 = arith.constant 0 : index
    %c0_48 = arith.constant 0 : index
    %101 = vector.load %arg11[%c0_46, %c0_47, %c0_48] : memref<1x1x128xf32, #tpu.memory_space<vmem>>, vector<1x1x128xf32>
    %102 = vector.shape_cast %101 : vector<1x1x128xf32> to vector<1x128xf32>
    %103 = vector.broadcast %102 : vector<1x128xf32> to vector<16x128xf32>
    %104 = arith.addf %100, %103 : vector<16x128xf32>
    %cst_49 = arith.constant 5.000000e-01 : f32
    %105 = vector.broadcast %cst_49 : f32 to vector<16x128xf32>
    %106 = arith.mulf %105, %104 : vector<16x128xf32>
    %cst_50 = arith.constant 0.707106769 : f32
    %107 = vector.broadcast %cst_50 : f32 to vector<16x128xf32>
    %108 = arith.mulf %104, %107 : vector<16x128xf32>
    %cst_51 = arith.constant 0.000000e+00 : f32
    %109 = vector.broadcast %cst_51 : f32 to vector<16x128xf32>
    %110 = arith.cmpf oge, %108, %109 : vector<16x128xf32>
    %cst_52 = arith.constant 1.000000e+00 : f32
    %cst_53 = arith.constant -1.000000e+00 : f32
    %111 = vector.broadcast %cst_52 : f32 to vector<16x128xf32>
    %112 = vector.broadcast %cst_53 : f32 to vector<16x128xf32>
    %113 = arith.select %110, %111, %112 : vector<16x128xi1>, vector<16x128xf32>
    %114 = math.absf %108 : vector<16x128xf32>
    %cst_54 = arith.constant 0.327591091 : f32
    %115 = vector.broadcast %cst_54 : f32 to vector<16x128xf32>
    %116 = arith.mulf %115, %114 : vector<16x128xf32>
    %cst_55 = arith.constant 1.000000e+00 : f32
    %117 = vector.broadcast %cst_55 : f32 to vector<16x128xf32>
    %118 = arith.addf %117, %116 : vector<16x128xf32>
    %cst_56 = arith.constant 1.000000e+00 : f32
    %119 = vector.broadcast %cst_56 : f32 to vector<16x128xf32>
    %120 = arith.divf %119, %118 : vector<16x128xf32>
    %cst_57 = arith.constant 1.06140542 : f32
    %121 = vector.broadcast %cst_57 : f32 to vector<16x128xf32>
    %122 = arith.mulf %121, %120 : vector<16x128xf32>
    %cst_58 = arith.constant -1.45315206 : f32
    %123 = vector.broadcast %cst_58 : f32 to vector<16x128xf32>
    %124 = arith.addf %122, %123 : vector<16x128xf32>
    %125 = arith.mulf %124, %120 : vector<16x128xf32>
    %cst_59 = arith.constant 1.42141378 : f32
    %126 = vector.broadcast %cst_59 : f32 to vector<16x128xf32>
    %127 = arith.addf %125, %126 : vector<16x128xf32>
    %128 = arith.mulf %127, %120 : vector<16x128xf32>
    %cst_60 = arith.constant -0.284496725 : f32
    %129 = vector.broadcast %cst_60 : f32 to vector<16x128xf32>
    %130 = arith.addf %128, %129 : vector<16x128xf32>
    %131 = arith.mulf %130, %120 : vector<16x128xf32>
    %cst_61 = arith.constant 0.254829586 : f32
    %132 = vector.broadcast %cst_61 : f32 to vector<16x128xf32>
    %133 = arith.addf %131, %132 : vector<16x128xf32>
    %134 = arith.mulf %133, %120 : vector<16x128xf32>
    %cst_62 = arith.constant 0.000000e+00 : f32
    %135 = vector.broadcast %cst_62 : f32 to vector<16x128xf32>
    %136 = arith.subf %135, %114 : vector<16x128xf32>
    %137 = arith.mulf %136, %114 : vector<16x128xf32>
    %138 = math.exp %137 : vector<16x128xf32>
    %139 = arith.mulf %134, %138 : vector<16x128xf32>
    %cst_63 = arith.constant 1.000000e+00 : f32
    %140 = vector.broadcast %cst_63 : f32 to vector<16x128xf32>
    %141 = arith.subf %140, %139 : vector<16x128xf32>
    %142 = arith.mulf %113, %141 : vector<16x128xf32>
    %cst_64 = arith.constant 1.000000e+00 : f32
    %143 = vector.broadcast %cst_64 : f32 to vector<16x128xf32>
    %144 = arith.addf %143, %142 : vector<16x128xf32>
    %145 = arith.mulf %106, %144 : vector<16x128xf32>
    %146 = arith.truncf %145 : vector<16x128xf32> to vector<16x128xbf16>
    %c0_65 = arith.constant 0 : index
    %c0_66 = arith.constant 0 : index
    %c0_67 = arith.constant 0 : index
    %147 = vector.load %arg12[%c0_65, %c0_66, %c0_67] : memref<1x128x32xbf16, #tpu.memory_space<vmem>>, vector<1x128x32xbf16>
    %148 = vector.shape_cast %147 : vector<1x128x32xbf16> to vector<128x32xbf16>
    %cst_68 = arith.constant dense<0.000000e+00> : vector<16x32xf32>
    %149 = tpu.matmul %146, %148, %cst_68 {dimension_numbers = #tpu.dot_dimension_numbers<[1], [0], [0], [1], [0, 0, 1, 1], [], []>} : vector<16x128xbf16>, vector<128x32xbf16>, vector<16x32xf32> -> vector<16x32xf32>
    %c0_69 = arith.constant 0 : index
    %c0_70 = arith.constant 0 : index
    %c0_71 = arith.constant 0 : index
    %150 = vector.load %arg13[%c0_69, %c0_70, %c0_71] : memref<1x1x32xf32, #tpu.memory_space<vmem>>, vector<1x1x32xf32>
    %151 = vector.shape_cast %150 : vector<1x1x32xf32> to vector<1x32xf32>
    %152 = vector.broadcast %151 : vector<1x32xf32> to vector<16x32xf32>
    %153 = arith.addf %149, %152 : vector<16x32xf32>
    %154 = arith.addf %96, %153 : vector<16x32xf32>
    %c0_72 = arith.constant 0 : index
    %c0_73 = arith.constant 0 : index
    %c0_74 = arith.constant 0 : index
    %155 = vector.load %arg14[%c0_72, %c0_73, %c0_74] : memref<1x1x32xf32, #tpu.memory_space<vmem>>, vector<1x1x32xf32>
    %156 = vector.shape_cast %155 : vector<1x1x32xf32> to vector<1x32xf32>
    %c0_75 = arith.constant 0 : index
    %c0_76 = arith.constant 0 : index
    %c0_77 = arith.constant 0 : index
    %157 = vector.load %arg15[%c0_75, %c0_76, %c0_77] : memref<1x1x32xf32, #tpu.memory_space<vmem>>, vector<1x1x32xf32>
    %158 = vector.shape_cast %157 : vector<1x1x32xf32> to vector<1x32xf32>
    %cst_78 = arith.constant dense<0.000000e+00> : vector<16xf32>
    %159 = vector.multi_reduction <add>, %154, %cst_78 [1] : vector<16x32xf32> to vector<16xf32>
    %160 = vector.shape_cast %159 : vector<16xf32> to vector<16x1xf32>
    %cst_79 = arith.constant 3.200000e+01 : f32
    %161 = vector.broadcast %cst_79 : f32 to vector<16x1xf32>
    %162 = arith.divf %160, %161 : vector<16x1xf32>
    %163 = vector.broadcast %162 : vector<16x1xf32> to vector<16x32xf32>
    %164 = arith.subf %154, %163 : vector<16x32xf32>
    %165 = arith.mulf %164, %164 : vector<16x32xf32>
    %cst_80 = arith.constant dense<0.000000e+00> : vector<16xf32>
    %166 = vector.multi_reduction <add>, %165, %cst_80 [1] : vector<16x32xf32> to vector<16xf32>
    %167 = vector.shape_cast %166 : vector<16xf32> to vector<16x1xf32>
    %cst_81 = arith.constant 3.200000e+01 : f32
    %168 = vector.broadcast %cst_81 : f32 to vector<16x1xf32>
    %169 = arith.divf %167, %168 : vector<16x1xf32>
    %170 = vector.broadcast %162 : vector<16x1xf32> to vector<16x32xf32>
    %171 = arith.subf %154, %170 : vector<16x32xf32>
    %cst_82 = arith.constant 9.99999996E-13 : f32
    %172 = vector.broadcast %cst_82 : f32 to vector<16x1xf32>
    %173 = arith.addf %169, %172 : vector<16x1xf32>
    %174 = math.rsqrt %173 : vector<16x1xf32>
    %175 = vector.broadcast %174 : vector<16x1xf32> to vector<16x32xf32>
    %176 = arith.mulf %171, %175 : vector<16x32xf32>
    %177 = vector.broadcast %156 : vector<1x32xf32> to vector<16x32xf32>
    %178 = arith.mulf %176, %177 : vector<16x32xf32>
    %179 = vector.broadcast %158 : vector<1x32xf32> to vector<16x32xf32>
    %180 = arith.addf %178, %179 : vector<16x32xf32>
    %c0_83 = arith.constant 0 : index
    %c0_84 = arith.constant 0 : index
    %181 = vector.load %arg17[%c0_83, %c0_84] : memref<16x32xf32, #tpu.memory_space<vmem>>, vector<16x32xf32>
    tpu.vector_store %arg17[%c0_83, %c0_84], %180 {strides = array<i32>} : memref<16x32xf32, #tpu.memory_space<vmem>>, vector<16x32xf32>,
    %c1_i32 = arith.constant 1 : i32
    %182 = arith.cmpi eq, %arg1, %c1_i32 : i32
    %183 = arith.extui %182 : i1 to i32
    %c0_i32_85 = arith.constant 0 : i32
    %184 = arith.cmpi ne, %183, %c0_i32_85 : i32
    scf.if %184 {
      %185 = arith.truncf %180 : vector<16x32xf32> to vector<16x32xbf16>
      %c0_86 = arith.constant 0 : index
      %c0_87 = arith.constant 0 : index
      %186 = vector.load %arg16[%c0_86, %c0_87] : memref<16x32xbf16, #tpu.memory_space<vmem>>, vector<16x32xbf16>
      tpu.vector_store %arg16[%c0_86, %c0_87], %185 {strides = array<i32>} : memref<16x32xbf16, #tpu.memory_space<vmem>>, vector<16x32xbf16>,
    } else {
    }
    return
  }
  func.func @transform_0(%arg0: i32, %arg1: i32) -> (i32, i32) {
    %c0_i32 = arith.constant 0 : i32
    %c0_i32_0 = arith.constant 0 : i32
    return %arg0, %c0_i32 : i32, i32
  }
  func.func @transform_1(%arg0: i32, %arg1: i32) -> (i32, i32, i32) {
    %c0_i32 = arith.constant 0 : i32
    %c0_i32_0 = arith.constant 0 : i32
    %c0_i32_1 = arith.constant 0 : i32
    return %arg0, %c0_i32, %c0_i32_0 : i32, i32, i32
  }
  func.func @transform_2(%arg0: i32, %arg1: i32) -> (i32, i32, i32) {
    %c0_i32 = arith.constant 0 : i32
    %c0_i32_0 = arith.constant 0 : i32
    %c0_i32_1 = arith.constant 0 : i32
    return %arg1, %c0_i32, %c0_i32_0 : i32, i32, i32
  }
  func.func @transform_3(%arg0: i32, %arg1: i32) -> (i32, i32, i32) {
    %c0_i32 = arith.constant 0 : i32
    %c0_i32_0 = arith.constant 0 : i32
    %c0_i32_1 = arith.constant 0 : i32
    return %arg1, %c0_i32, %c0_i32_0 : i32, i32, i32
  }
  func.func @transform_4(%arg0: i32, %arg1: i32) -> (i32, i32, i32) {
    %c0_i32 = arith.constant 0 : i32
    %c0_i32_0 = arith.constant 0 : i32
    %c0_i32_1 = arith.constant 0 : i32
    return %arg1, %c0_i32, %c0_i32_0 : i32, i32, i32
  }
  func.func @transform_5(%arg0: i32, %arg1: i32) -> (i32, i32, i32) {
    %c0_i32 = arith.constant 0 : i32
    %c0_i32_0 = arith.constant 0 : i32
    %c0_i32_1 = arith.constant 0 : i32
    return %arg1, %c0_i32, %c0_i32_0 : i32, i32, i32
  }
  func.func @transform_6(%arg0: i32, %arg1: i32) -> (i32, i32, i32) {
    %c0_i32 = arith.constant 0 : i32
    %c0_i32_0 = arith.constant 0 : i32
    %c0_i32_1 = arith.constant 0 : i32
    return %arg1, %c0_i32, %c0_i32_0 : i32, i32, i32
  }
  func.func @transform_7(%arg0: i32, %arg1: i32) -> (i32, i32, i32) {
    %c0_i32 = arith.constant 0 : i32
    %c0_i32_0 = arith.constant 0 : i32
    %c0_i32_1 = arith.constant 0 : i32
    return %arg1, %c0_i32, %c0_i32_0 : i32, i32, i32
  }
  func.func @transform_8(%arg0: i32, %arg1: i32) -> (i32, i32, i32) {
    %c0_i32 = arith.constant 0 : i32
    %c0_i32_0 = arith.constant 0 : i32
    %c0_i32_1 = arith.constant 0 : i32
    return %arg1, %c0_i32, %c0_i32_0 : i32, i32, i32
  }
  func.func @transform_9(%arg0: i32, %arg1: i32) -> (i32, i32, i32) {
    %c0_i32 = arith.constant 0 : i32
    %c0_i32_0 = arith.constant 0 : i32
    %c0_i32_1 = arith.constant 0 : i32
    return %arg1, %c0_i32, %c0_i32_0 : i32, i32, i32
  }
  func.func @transform_10(%arg0: i32, %arg1: i32) -> (i32, i32, i32) {
    %c0_i32 = arith.constant 0 : i32
    %c0_i32_0 = arith.constant 0 : i32
    %c0_i32_1 = arith.constant 0 : i32
    return %arg1, %c0_i32, %c0_i32_0 : i32, i32, i32
  }
  func.func @transform_11(%arg0: i32, %arg1: i32) -> (i32, i32, i32) {
    %c0_i32 = arith.constant 0 : i32
    %c0_i32_0 = arith.constant 0 : i32
    %c0_i32_1 = arith.constant 0 : i32
    return %arg1, %c0_i32, %c0_i32_0 : i32, i32, i32
  }
  func.func @transform_12(%arg0: i32, %arg1: i32) -> (i32, i32, i32) {
    %c0_i32 = arith.constant 0 : i32
    %c0_i32_0 = arith.constant 0 : i32
    %c0_i32_1 = arith.constant 0 : i32
    return %arg1, %c0_i32, %c0_i32_0 : i32, i32, i32
  }
  func.func @transform_13(%arg0: i32, %arg1: i32) -> (i32, i32, i32) {
    %c0_i32 = arith.constant 0 : i32
    %c0_i32_0 = arith.constant 0 : i32
    %c0_i32_1 = arith.constant 0 : i32
    return %arg1, %c0_i32, %c0_i32_0 : i32, i32, i32
  }
  func.func @transform_14(%arg0: i32, %arg1: i32) -> (i32, i32) {
    %c0_i32 = arith.constant 0 : i32
    %c0_i32_0 = arith.constant 0 : i32
    return %arg0, %c0_i32 : i32, i32
  }
}

</mosaic_0001>

<bundles_post_ra>
// kernel: bert4rec_forward.4
= control target key start
LH: loop header
LB: loop body
LE: loop exit
PB: predicated region body
PF: predicated region fallthrough
CT: control target
= control target key end

     0   :  { %vm29_vm0 = vcmask 130048   ;;  %vm46_vm1 = vcmask 254976   ;;  %s91_s1 = inlined_call_operand.vmem [shape: bf16[16,32], index: 1, kind: input, shape index: {}]   ;;  %s92_s0 = inlined_call_operand.vmem [shape: f32[2,16], index: 0, kind: input, shape index: {}]   ;;  %s93_s2 = inlined_call_operand.vmem [shape: f32[1,32], index: 2, kind: input, shape index: {}]   ;;  %s94_s3 = inlined_call_operand.vmem [shape: f32[2,32], index: 3, kind: output, shape index: {}]  }
   0x1   :  { %v57_v0 = vld [vmem:[%s91_s1] sm:$0xff] }
   0x2   :  { %v15_v1 = vld [vmem:[%s92_s0] sm:$0x3]  ;;  %40 = vmatpush.bf16.msra.mxu0 %v57_v0 }
   0x3   :  { %v16_v2 = vpack.c.bf16 %v15_v1, %v15_v1  ;;  %v58_v3 = vld [vmem:[%s93_s2] ss:$0 sm:$0xff] }
   0x5   :  { %56 = vmatmul.msk.bf16.vlgmr.msra.gmra.mxu0 %vm29_vm0, %v16_v2 }
  0x82   :  { %v42_v4 = vpop.f32.mrf.mxu0 }
  0x83   :  { %v43_v5 = vadd.f32 %v58_v3, %v42_v4 }
  0x85   :  { %47 = vst.msk [vmem:[%s94_s3] sm:$0x3] %vm46_vm1, %v43_v5 }
  0x8a   :  { %v44_v6 = vpop.f32.mrf.mxu0 }

// kernel: bert4rec_forward.7
= control target key start
LH: loop header
LB: loop body
LE: loop exit
PB: predicated region body
PF: predicated region fallthrough
CT: control target
= control target key end

     0   :  { %s172_s0 = inlined_call_operand.vmem [shape: bf16[16,32], index: 0, kind: input, shape index: {}]   ;;  %s173_s1 = inlined_call_operand.vmem [shape: bf16[32,128], index: 1, kind: input, shape index: {}]   ;;  %s174_s2 = inlined_call_operand.vmem [shape: f32[1,128], index: 2, kind: input, shape index: {}]   ;;  %s175_s3 = inlined_call_operand.hbm [shape: bf16[16,128], index: 3, kind: output, shape index: {}]  }
   0x1   :  { %v98_v0 = vld [vmem:[%s173_s1 + $0x8] sm:$0xff] }
   0x2   :  { %8 = vsyncpa [#allocation3], 0  ;;  %53 = vmatpush.bf16.msra.mxu0 %v98_v0  ;;  %v97_v1 = vld [vmem:[%s173_s1] sm:$0xff]  ;;  %vm43_vm0 = vcmask 261120   ;;  %s134_s20 = smov [#allocation2]   ;;  %s71_s24 = sshll.u32 %s175_s3, 4  ;;  %s72_s24 = int_to_ptr.hbm [resolvable:$true] %s71_s24 }
   0x3   :  { %v96_v2 = vld [vmem:[%s172_s0] sm:$0xff]  ;;  %s69_s21 = sshll.u32 %s134_s20, 4  ;;  %s135_s0 = smov 64   ;;  %s70_s21 = int_to_ptr.vmem [resolvable:$true] %s69_s21 }
   0x4   :  { %v107_v4 = vld [vmem:[%s174_s2] ss:$0 sm:$0xff]  ;;  %s136_s1 = smov 4  }
   0x6   :  { %54 = vmatpush.bf16.msra.mxu0 %v97_v1 }
   0x9   :  { %95 = vmatmul.msk.bf16.vlgmr.msra.gmra.mxu0 %vm43_vm0, %v96_v2 }
  0x86   :  { %v56_v3 = vpop.f32.mrf.mxu0 }
  0x87   :  { %v57_v6 = vadd.f32 %v107_v4, %v56_v3 }
  0x8e   :  { %v58_v5 = vpop.f32.mrf.mxu0 }
  0x8f   :  { %v59_v7 = vadd.f32 %v107_v4, %v58_v5 }
  0x91   :  { %v102_v8 = vpack.c.bf16 %v59_v7, %v57_v6 }
  0x93   :  { %103 = vst [vmem:[#allocation2] sm:$0xff] %v102_v8  }
  0x94   :  { %77 = dma.vmem_to_hbm [thread:$0]  %s70_s21, 128, %s72_s24, [#allocation3], %s135_s0, %s135_s0, %s136_s1  }
  0x95   :  { %132 = dma.done.wait [#allocation3], 128  }
  0x96   :  { %133 = vsyncadd [#allocation3], 4294967168 }
  0x97   :  { %82 = vsyncpa [#allocation3], 1 }

// kernel: bert4rec_forward.5
= control target key start
LH: loop header
LB: loop body
LE: loop exit
PB: predicated region body
PF: predicated region fallthrough
CT: control target
= control target key end

     0   :  { %s475_s21 = smov 0   ;;  %s520_s0 = inlined_call_operand.vmem [shape: f32[2,8,32], index: 0, kind: input, shape index: {}]   ;;  %s521_s1 = inlined_call_operand.vmem [shape: f32[8,32], index: 1, kind: input, shape index: {}]   ;;  %s522_s2 = inlined_call_operand.vmem [shape: f32[1,32], index: 2, kind: input, shape index: {}]   ;;  %s523_s3 = inlined_call_operand.vmem [shape: f32[2,1,32], index: 3, kind: input, shape index: {}]   ;;  %s524_s4 = inlined_call_operand.vmem [shape: f32[1,32], index: 4, kind: input, shape index: {}]   ;;  %s525_s5 = inlined_call_operand.vmem [shape: f32[1,32], index: 5, kind: input, shape index: {}]   ;;  %s526_s6 = inlined_call_operand.vmem [shape: f32[2,8,32], index: 6, kind: output, shape index: {}]  }
   0x1 LB: > { %s403_s22 = sadd.s32 4294967295, %s437_s21   ;;  %p407_p0 = scmp.ge.s32.totalorder %s437_s21, 1  ;;  %s437_s21 = sphi %s475_s21, %s16_s21  }
   0x2   : > { %p219_p1 = scmp.lt.s32.totalorder %s437_s21, 3 }
   0x4   : > { %p220_p2 = pnand %p407_p0, %p219_p1 }
   0x5   : > { %p250_p3 = scmp.lt.s32.totalorder (!%p220_p2), %s403_s22, 1 }
   0x6   : > { %223 = sbr.rel (%p220_p2) target bundleno = 562 (0x232), region = 44 }
   0xb   : > { %s528_s22 = smov (!%p250_p3, %s403_s22), 1  ;;  %v262_v0 = vld [vmem:[%s521_s1] sm:$0xff]  ;;  %vm271_vm0 = vcmask 261120   ;;  %v439_v6 = vmov 32.0  }
   0xc   : > { %s408_s23 = sshll.u32 %s528_s22, 3  ;;  %v421_v1 = vld [vmem:[%s522_s2] ss:$0 sm:$0xff]  ;;  %425 = vrcp.f32 %v439_v6  ;;  %s256_s9 = scalar_lea.vmem %s523_s3, %s528_s22 }
   0xd   : > { %s253_s28 = scalar_lea.vmem %s520_s0, %s408_s23  ;;  %v422_v27 = vld [vmem:[%s524_s4] ss:$0 sm:$0xff]  ;;  %s260_s16 = scalar_lea.vmem %s526_s6, %s408_s23 }
   0xe   : > { %v261_v2 = vld [vmem:[%s253_s28] sm:$0xff] }
   0xf   : > { %v266_v3 = vadd.f32 %v262_v0, %v261_v2  ;;  %v423_v30 = vld [vmem:[%s525_s5] ss:$0 sm:$0xff] }
  0x10   : > { %v424_v32 = vld [vmem:[%s256_s9] ss:$0 sm:$0xff] }
  0x11   : > { %v270_v4 = vadd.f32 %v421_v1, %v266_v3 }
  0x12   : > { %v426_v7 = vpop.eup %425 }
  0x13   : > { %v272_v5 = vsel %vm271_vm0, %v270_v4, 0.0  ;;  %v276_v8 = vmul.f32 32.0, %v426_v7  ;;  %vm280_vm1 = vweird.f32 %v426_v7 }
  0x14   : > { %273 = vadd.xlane.f32.xlu0 %v272_v5 }
  0x15   : > { %v277_v9 = vsub.f32 1.0, %v276_v8 }
  0x17   : > { %v278_v10 = vmul.f32 %v426_v7, %v277_v9 }
  0x19   : > { %v279_v11 = vadd.f32 %v426_v7, %v278_v10 }
  0x1b   : > { %v281_v12 = vsel %vm280_vm1, %v426_v7, %v279_v11 }
  0x87   : > { %v274_v13 = vpop.xlane.xlu0 %273 }
  0x88   : > { %v282_v14 = vmul.f32 %v281_v12, %v274_v13 }
  0x8a   : > { %v283_v15 = vsub.f32 %v270_v4, %v282_v14 }
  0x8c   : > { %v284_v16 = vmul.f32 %v283_v15, %v283_v15 }
  0x8e   : > { %v285_v17 = vsel %vm271_vm0, %v284_v16, 0.0 }
  0x8f   : > { %286 = vadd.xlane.f32.xlu0 %v285_v17 }
 0x102   : > { %v287_v18 = vpop.xlane.xlu0 %286 }
 0x103   : > { %v288_v19 = vmul.f32 %v287_v18, %v281_v12 }
 0x105   : > { %v289_v20 = vadd.f32 1e-12, %v288_v19 }
 0x107   : > { %427 = vrsqrt.f32 %v289_v20  ;;  %vm296_vm3 = vweird.f32 %v289_v20 }
 0x10d   : > { %v428_v21 = vpop.eup %427 }
 0x10e   : > { %v291_v22 = vmul.f32 %v428_v21, %v289_v20  ;;  %vm297_vm2 = vweird.f32 %v428_v21 }
 0x10f   : > { %vm298_vm4 = vmor %vm296_vm3, %vm297_vm2 }
 0x110   : > { %v292_v23 = vmul.f32 %v428_v21, %v291_v22 }
 0x112   : > { %v293_v24 = vmul.f32 0.5, %v292_v23 }
 0x114   : > { %v294_v25 = vsub.f32 1.5, %v293_v24 }
 0x116   : > { %v295_v26 = vmul.f32 %v428_v21, %v294_v25 }
 0x118   : > { %v299_v28 = vsel %vm298_vm4, %v428_v21, %v295_v26 }
 0x119   : > { %v300_v29 = vmul.f32 %v299_v28, %v283_v15 }
 0x11b   : > { %v304_v31 = vmul.f32 %v422_v27, %v300_v29 }
 0x11d   : > { %v308_v33 = vadd.f32 %v423_v30, %v304_v31 }
 0x11f   : > { %v313_v34 = vadd.f32 %v424_v32, %v308_v33 }
 0x121   : > { %v314_v35 = vadd.f32 %v313_v34, %v262_v0 }
 0x123   : > { %v315_v36 = vadd.f32 %v421_v1, %v314_v35 }
 0x125   : > { %v316_v37 = vsel %vm271_vm0, %v315_v36, 0.0 }
 0x126   : > { %317 = vadd.xlane.f32.xlu1 %v316_v37 }
 0x199   : > { %v318_v38 = vpop.xlane.xlu1 %317 }
 0x19a   : > { %v319_v39 = vmul.f32 %v318_v38, %v281_v12 }
 0x19c   : > { %v320_v40 = vsub.f32 %v315_v36, %v319_v39 }
 0x19e   : > { %v321_v41 = vmul.f32 %v320_v40, %v320_v40 }
 0x1a0   : > { %v322_v42 = vsel %vm271_vm0, %v321_v41, 0.0 }
 0x1a1   : > { %323 = vadd.xlane.f32.xlu1 %v322_v42 }
 0x214   : > { %v324_v43 = vpop.xlane.xlu1 %323 }
 0x215   : > { %v325_v44 = vmul.f32 %v324_v43, %v281_v12 }
 0x217   : > { %v326_v45 = vadd.f32 1e-12, %v325_v44 }
 0x219   : > { %429 = vrsqrt.f32 %v326_v45  ;;  %vm333_vm6 = vweird.f32 %v326_v45 }
 0x21f   : > { %v430_v46 = vpop.eup %429 }
 0x220   : > { %v328_v47 = vmul.f32 %v430_v46, %v326_v45  ;;  %vm334_vm5 = vweird.f32 %v430_v46 }
 0x221   : > { %vm335_vm7 = vmor %vm333_vm6, %vm334_vm5 }
 0x222   : > { %v329_v48 = vmul.f32 %v430_v46, %v328_v47 }
 0x224   : > { %v330_v49 = vmul.f32 0.5, %v329_v48 }
 0x226   : > { %v331_v50 = vsub.f32 1.5, %v330_v49 }
 0x228   : > { %v332_v51 = vmul.f32 %v430_v46, %v331_v50 }
 0x22a   : > { %v336_v52 = vsel %vm335_vm7, %v430_v46, %v332_v51 }
 0x22b   : > { %v337_v53 = vmul.f32 %v336_v52, %v320_v40 }
 0x22d   : > { %v338_v54 = vmul.f32 %v422_v27, %v337_v53 }
 0x22f   : > { %v339_v55 = vadd.f32 %v423_v30, %v338_v54 }
 0x231   : > { %340 = vst.msk [vmem:[%s260_s16] sm:$0xff] %vm271_vm0, %v339_v55 }
 0x232 PF: > { %s16_s21 = sadd.s32 1, %s437_s21  }
 0x233   : > { %p13_p4 = scmp.ge.s32.totalorder %s16_s21, 4  }
 0x235   :  { %15 = sbr.rel (!%p13_p4) target bundleno = 1 (0x1), region = 77 }

// kernel: bert4rec_forward.6
= control target key start
LH: loop header
LB: loop body
LE: loop exit
PB: predicated region body
PF: predicated region fallthrough
CT: control target
= control target key end

     0   :  { %s1871_s29 = smov 0   ;;  %s1873_s30 = smov 0   ;;  %s2116_s0 = inlined_call_operand.vmem [shape: f32[16,32], index: 0, kind: input, shape index: {}]   ;;  %s2117_s1 = inlined_call_operand.vmem [shape: f32[2,1,8], index: 1, kind: input, shape index: {}]   ;;  %s2118_s2 = inlined_call_operand.vmem [shape: bf16[2,32,96], index: 2, kind: input, shape index: {}]   ;;  %s2119_s3 = inlined_call_operand.vmem [shape: f32[2,1,96], index: 3, kind: input, shape index: {}]   ;;  %s2120_s4 = inlined_call_operand.vmem [shape: bf16[2,32,32], index: 4, kind: input, shape index: {}]   ;;  %s2121_s5 = inlined_call_operand.vmem [shape: f32[2,1,32], index: 5, kind: input, shape index: {}]   ;;  %s2122_s6 = inlined_call_operand.vmem [shape: f32[2,1,32], index: 6, kind: input, shape index: {}]   ;;  %s2123_s7 = inlined_call_operand.vmem [shape: f32[2,1,32], index: 7, kind: input, shape index: {}]   ;;  %s2124_s8 = inlined_call_operand.vmem [shape: bf16[2,32,128], index: 8, kind: input, shape index: {}]   ;;  %s2125_s9 = inlined_call_operand.vmem [shape: f32[2,1,128], index: 9, kind: input, shape index: {}]   ;;  %s2126_s10 = inlined_call_operand.vmem [shape: bf16[2,128,32], index: 10, kind: input, shape index: {}]   ;;  %s2127_s11 = inlined_call_operand.vmem [shape: f32[2,1,32], index: 11, kind: input, shape index: {}]   ;;  %s2128_s12 = inlined_call_operand.vmem [shape: f32[2,1,32], index: 12, kind: input, shape index: {}]   ;;  %s2129_s13 = inlined_call_operand.vmem [shape: f32[2,1,32], index: 13, kind: input, shape index: {}]   ;;  %s2130_s14 = inlined_call_operand.vmem [shape: bf16[16,32], index: 14, kind: output, shape index: {}]  }
   0x1   :  { %2136 = sst [smem:[#allocation7_spill]] %s2116_s0  ;;  %s1875_s15 = smov 0  }
   0x2   :  { %2137 = sst [smem:[#allocation8_spill]] %s2117_s1 }
   0x3   :  { %2138 = sst [smem:[#allocation9_spill]] %s2118_s2 }
   0x4   :  { %2139 = sst [smem:[#allocation10_spill]] %s2119_s3 }
   0x5   :  { %2140 = sst [smem:[#allocation11_spill]] %s2120_s4 }
   0x6   :  { %2141 = sst [smem:[#allocation12_spill]] %s2130_s14 }
   0x7 LB: > { %2142 = sst [smem:[#allocation4_spill]] %s1782_s30  ;;  %s33_s16 = sadd.s32 1, %s1782_s30  ;;  %s1786_s15 = sphi %s1875_s15, %s24_s15   ;;  %s1782_s30 = sphi %s1873_s30, %s2156_s30   ;;  %s1778_s29 = sphi %s1871_s29, %s2155_s29  }
   0x8   : > { %2143 = sst [smem:[#allocation5_spill]] %s1786_s15  ;;  %p1583_p0 = scmp.ge.s32.totalorder %s1786_s15, 1 }
   0x9   : > { %p34_p1 = scmp.ge.s32.totalorder %s33_s16, 2  ;;  %p539_p2 = scmp.lt.s32.totalorder %s1786_s15, 3 }
   0xb   : > { %s2158_s16 = smov (%p34_p1, %s33_s16), 0  ;;  %p540_p3 = pnand %p1583_p0, %p539_p2 }
   0xc   : > { %2144 = sst [smem:[#allocation6_spill]] %s2158_s16  ;;  %p644_p4 = scmp.lt.s32.totalorder (!%p540_p3), %s1778_s29, 1 }
   0xd   : > { %543 = sbr.rel (%p540_p3) target bundleno = 2005 (0x7d5), region = 76  ;;  %s2145_s3 = sld [smem:[#allocation10_spill]] (!%p540_p3) }
   0xe   : > { %s2146_s2 = sld [smem:[#allocation9_spill]] (!%p540_p3)  ;;  %p1592_p5 = scmp.ne.s32.totalorder (!%p540_p3), %s1778_s29, 0 }
   0xf   : > { %s2147_s4 = sld [smem:[#allocation11_spill]] (!%p540_p3) }
  0x12   : > { %s1893_s17 = scalar_select %p644_p4, %s1778_s29, 1 }
  0x13   : > { %s2148_s16 = sld [smem:[#allocation7_spill]] (!%p1592_p5) }
  0x14   : > { %s1669_s18 = sshll.u32 %s1893_s17, 4  ;;  %s651_s21 = scalar_lea.vmem %s2145_s3, %s1893_s17 }
  0x15   : > { %s648_s24 = scalar_lea.vmem %s2146_s2, %s1669_s18  ;;  %s1906_s27 = scalar_lea.vmem %s2147_s4, %s1669_s18 }
  0x16   : > { %s1923_s23 = scalar_lea.vmem %s2124_s8, %s1669_s18  ;;  %s673_s2 = scalar_lea.vmem %s2125_s9, %s1893_s17 }
  0x17   : > { %s1672_s4 = sshll.u32 %s1893_s17, 6  ;;  %s681_s0 = scalar_lea.vmem %s2127_s11, %s1893_s17 }
  0x18   : > { %s1933_s30 = scalar_lea.vmem %s2126_s10, %s1672_s4  ;;  %s684_s3 = scalar_lea.vmem %s2128_s12, %s1893_s17 }
  0x19   : > { %s687_s1 = scalar_lea.vmem %s2129_s13, %s1893_s17  ;;  %698 = sbr.rel (%p1592_p5) target bundleno = 33 (0x21), region = 80 }
  0x1e   : > { %v699_v0 = vld [vmem:[%s2148_s16] sm:$0xff]  ;;  %vm701_vm0 = vcmask 261120   ;;  %v700_v1 = vld [vmem:[%s2148_s16 + $0x8] sm:$0xff] }
  0x1f   : > { %702 = vst.msk [vmem:[#allocation2] sm:$0xff] %vm701_vm0, %v699_v0 }
  0x20   : > { %703 = vst.msk [vmem:[#allocation2 + $0x8] sm:$0xff] %vm701_vm0, %v700_v1 }
  0x21 PF: > { %v1674_v2 = vld [vmem:[%s648_s24 + $0x8] sm:$0xff]  ;;  %v1673_v3 = vld [vmem:[%s648_s24] sm:$0xff]  ;;  %vm729_vm1 = vcmask 261120   ;;  %s1788_s24 = smov 80   ;;  %s1789_s20 = smov 96   ;;  %vm760_vm2 = vcmask 130048  }
  0x22   : > { %739 = vmatpush.bf16.msra.mxu0 %v1674_v2  ;;  %v1720_v7 = vld [vmem:[%s651_s21] ss:$0 sm:$0xff]  ;;  %s1790_s21 = smov 112   ;;  %s2149_s19 = sld [smem:[#allocation8_spill]]  ;;  %vm804_vm3 = vcmask 64512   ;;  %vm834_vm4 = vcmask 1043456  }
  0x23   : > { %s1791_s25 = smov 64   ;;  %s1792_s26 = smov 48   ;;  %vm874_vm5 = vcmask 125952   ;;  %vm999_vm6 = vcmask 257152  }
  0x24   : > { %s1793_s4 = smov 16   ;;  %s2152_s18 = scalar_lea.vmem %s2123_s7, %s1893_s17 }
  0x25   : > { %p1664_p6 = scmp.ne.s32.totalorder %s1778_s29, 1 }
  0x26   : > { %v1954_v4 = vld [vmem:[#allocation2] sm:$0xff]  ;;  %740 = vmatpush.bf16.msra.mxu0 %v1673_v3 }
  0x27   : > { %v1956_v5 = vld [vmem:[#allocation2 + $0x8] sm:$0xff] }
  0x28   : > { %v708_v6 = vpack.c.bf16 %v1956_v5, %v1954_v4  ;;  %v1721_v28 = vld [vmem:[%s2149_s19] ss:$0 sm:$0xff]  ;;  %v1722_v37 = vld [vmem:[%s2149_s19 + $0x1] ss:$0 sm:$0xff] }
  0x2a   : > { %1601 = vmatmul.msk.bf16.vlgmr.msra.gmra.mxu0 %vm729_vm1, %v708_v6 }
  0xa7   : > { %v742_v8 = vpop.f32.mrf.mxu0 }
  0xa8   : > { %v743_v9 = vadd.f32 %v1720_v7, %v742_v8 }
  0xaa   : > { %v747_v10 = vpack.c.bf16 %v743_v9, %v743_v9 }
  0xac   : > { %v756_v11 = vunpack.c.l.b16 %v747_v10 }
  0xae   : > { %v1961_v12 = vpack.c.b16 %v756_v11, %v756_v11 }
  0xaf   : > { %v744_v13 = vpop.f32.mrf.mxu0 }
  0xb0   : > { %v745_v14 = vadd.f32 %v1720_v7, %v744_v13  ;;  %879 = vrot.lane.b32.xlu1 %v1961_v12, %s1788_s24  ;;  %758 = vrot.lane.b32.xlu0 %v1961_v12, %s1789_s20 }
  0xb2   : > { %v748_v15 = vpack.c.bf16 %v745_v14, %v745_v14 }
  0xb4   : > { %v781_v16 = vunpack.c.l.b16 %v748_v15 }
  0xb6   : > { %v1965_v17 = vpack.c.b16 %v781_v16, %v781_v16 }
  0xb8   : > { %902 = vrot.lane.b32.xlu2 %v1965_v17, %s1788_s24  ;;  %877 = vrot.lane.b32.xlu1 %v1961_v12, %s1790_s21 }
  0xb9   : > { %783 = vrot.lane.b32.xlu0 %v1965_v17, %s1789_s20  ;;  %s2150_s20 = scalar_lea.vmem %s2121_s5, %s1893_s17 }
  0xc0   : > { %900 = vrot.lane.b32.xlu2 %v1965_v17, %s1790_s21  ;;  %s2151_s21 = scalar_lea.vmem %s2122_s6, %s1893_s17 }
 0x112   : > { %v903_v18 = vpop.permute.xlu2 %902 }
 0x113   : > { %v908_v23 = vsel %vm760_vm2, %v903_v18, 0 }
 0x11a   : > { %v901_v27 = vpop.permute.xlu2 %900 }
 0x122   : > { %v880_v19 = vpop.permute.xlu1 %879  ;;  %v759_v20 = vpop.permute.xlu0 %758 }
 0x123   : > { %v765_v21 = vsel %vm760_vm2, %v759_v20, 0  ;;  %v885_v22 = vsel %vm760_vm2, %v880_v19, 0 }
 0x124   : > { %774 = vmatpush.bf16.xpose.msra.mxu1 %v765_v21  ;;  %894 = vmatpush.bf16.xpose.msrb.mxu0 %v885_v22 }
 0x12a   : > { %v878_v24 = vpop.permute.xlu1 %877 }
 0x12b   : > { %v784_v25 = vpop.permute.xlu0 %783  ;;  %1602 = vmatmul.msk.bf16.vlgmr.msra.gmra.mxu1 %vm760_vm2, %v747_v10  ;;  %1606 = vmatmul.msk.bf16.vlgmr.msrb.gmra.mxu0 %vm760_vm2, %v878_v24 }
 0x12c   : > { %917 = vmatpush.bf16.xpose.msrb.mxu1 %v908_v23  ;;  %v789_v26 = vsel %vm760_vm2, %v784_v25, 0 }
 0x12d   : > { %798 = vmatpush.bf16.xpose.msra.mxu2 %v789_v26 }
 0x134   : > { %1603 = vmatmul.msk.bf16.vlgmr.msra.gmra.mxu2 %vm760_vm2, %v748_v15 }
 0x13b   : > { %1607 = vmatmul.msk.bf16.vlgmr.msrb.gmra.mxu1 %vm760_vm2, %v901_v27 }
 0x1a8   : > { %v776_v29 = vpop.f32.mrf.mxu1  ;;  %v896_v30 = vpop.f32.mrf.mxu0 }
 0x1a9   : > { %v777_v31 = vadd.f32 %v1721_v28, %v776_v29  ;;  %v897_v32 = vadd.f32 %v1721_v28, %v896_v30 }
 0x1ab   : > { %v923_v33 = vsel %vm804_vm3, %v897_v32, -inf  ;;  %v805_v34 = vsel %vm804_vm3, %v777_v31, -inf }
 0x1ac   : > { %924 = vmax.xlane.f32.xlu2 %v923_v33  ;;  %806 = vmax.xlane.f32.xlu0 %v805_v34 }
 0x1b0   : > { %v778_v35 = vpop.f32.mrf.mxu1  ;;  %v898_v36 = vpop.f32.mrf.mxu0 }
 0x1b7   : > { %v800_v38 = vpop.f32.mrf.mxu2 }
 0x1b8   : > { %v801_v39 = vadd.f32 %v1722_v37, %v800_v38  ;;  %v919_v40 = vpop.f32.mrf.mxu1 }
 0x1b9   : > { %v920_v41 = vadd.f32 %v1722_v37, %v919_v40  ;;  %v1677_v40 = vld [vmem:[%s1906_s27 + $0x8] sm:$0xff] }
 0x1ba   : > { %v808_v42 = vsel %vm804_vm3, %v801_v39, -inf  ;;  %1038 = vmatpush.bf16.msra.mxu0 %v1677_v40 }
 0x1bb   : > { %809 = vmax.xlane.f32.xlu1 %v808_v42  ;;  %v926_v43 = vsel %vm804_vm3, %v920_v41, -inf }
 0x1bc   : > { %927 = vmax.xlane.f32.xlu2 %v926_v43 }
 0x1bf   : > { %v802_v44 = vpop.f32.mrf.mxu2 }
 0x1c0   : > { %v921_v45 = vpop.f32.mrf.mxu1 }
 0x1c1   : > { %v1723_v45 = vld [vmem:[%s2150_s20] ss:$0 sm:$0xff] }
 0x1d4   : > { %829 = vrot.lane.b32.xlu1 %v1961_v12, %s1791_s25 }
 0x21f   : > { %v925_v46 = vpop.xlane.xlu2 %924  ;;  %v807_v47 = vpop.xlane.xlu0 %806 }
 0x220   : > { %v929_v48 = vsub.f32 %v897_v32, %v925_v46  ;;  %v811_v49 = vsub.f32 %v777_v31, %v807_v47 }
 0x222   : > { %v931_v50 = vmul.f32 1.442695, %v929_v48  ;;  %v813_v51 = vmul.f32 1.442695, %v811_v49 }
 0x224   : > { %1730 = vpow2.f32 %v931_v50 }
 0x225   : > { %1732 = vpow2.f32 %v813_v51 }
 0x22a   : > { %v1731_v52 = vpop.eup %1730 }
 0x22b   : > { %v1733_v53 = vpop.eup %1732  ;;  %v935_v54 = vsel %vm804_vm3, %v1731_v52, 0.0 }
 0x22c   : > { %936 = vadd.xlane.f32.xlu2 %v935_v54  ;;  %v817_v55 = vsel %vm804_vm3, %v1733_v53, 0.0  ;;  %v1794_v54 = vmov 32.0  }
 0x22d   : > { %818 = vadd.xlane.f32.xlu0 %v817_v55 }
 0x22e   : > { %v810_v56 = vpop.xlane.xlu1 %809 }
 0x22f   : > { %v812_v57 = vsub.f32 %v801_v39, %v810_v56  ;;  %v928_v58 = vpop.xlane.xlu2 %927 }
 0x230   : > { %v930_v59 = vsub.f32 %v920_v41, %v928_v58  ;;  %v1676_v41 = vld [vmem:[%s1906_s27] sm:$0xff] }
 0x231   : > { %v815_v60 = vmul.f32 1.442695, %v812_v57  ;;  %1039 = vmatpush.bf16.msra.mxu0 %v1676_v41 }
 0x232   : > { %v933_v61 = vmul.f32 1.442695, %v930_v59 }
 0x233   : > { %1734 = vpow2.f32 %v815_v60 }
 0x234   : > { %1736 = vpow2.f32 %v933_v61 }
 0x239   : > { %v1735_v62 = vpop.eup %1734 }
 0x23a   : > { %v1737_v63 = vpop.eup %1736  ;;  %v820_v0 = vsel %vm804_vm3, %v1735_v62, 0.0 }
 0x23b   : > { %821 = vadd.xlane.f32.xlu2 %v820_v0  ;;  %v938_v1 = vsel %vm804_vm3, %v1737_v63, 0.0 }
 0x23c   : > { %939 = vadd.xlane.f32.xlu1 %v938_v1 }
 0x241   : > { %851 = vrot.lane.b32.xlu0 %v1965_v17, %s1791_s25 }
 0x246   : > { %v830_v2 = vpop.permute.xlu1 %829 }
 0x247   : > { %v836_v3 = vsel %vm834_vm4, %v830_v2, 0 }
 0x248   : > { %845 = vmatpush.bf16.msra.mxu3 %v836_v3 }
 0x249   : > { %968 = vrot.lane.b32.xlu0 %v1965_v17, %s1792_s26 }
 0x253   : > { %947 = vrot.lane.b32.xlu2 %v1961_v12, %s1792_s26 }
 0x29f   : > { %v937_v7 = vpop.xlane.xlu2 %936 }
 0x2a0   : > { %v819_v6 = vpop.xlane.xlu0 %818 }
 0x2a1   : > { %1738 = vrcp.f32 %v819_v6 }
 0x2a7   : > { %v1739_v8 = vpop.eup %1738 }
 0x2a8   : > { %v825_v9 = vmul.f32 %v1739_v8, %v1733_v53 }
 0x2aa   : > { %v827_v10 = vpack.c.bf16 %v825_v9, %v825_v9 }
 0x2ac   : > { %1604 = vmatmul.msk.bf16.vlgmr.msra.gmra.mxu3 %vm804_vm3, %v827_v10  ;;  %v1678_v10 = vld [vmem:[%s1923_s23] sm:$0xff] }
 0x2ae   : > { %v822_v11 = vpop.xlane.xlu2 %821 }
 0x2af   : > { %1740 = vrcp.f32 %v822_v11  ;;  %v940_v24 = vpop.xlane.xlu1 %939 }
 0x2b0   : > { %1742 = vrcp.f32 %v937_v7  ;;  %v1679_v7 = vld [vmem:[%s1923_s23 + $0x8] sm:$0xff] }
 0x2b1   : > { %1744 = vrcp.f32 %v940_v24  ;;  %1141 = vmatpush.bf16.msra.mxu1 %v1679_v7 }
 0x2b2   : > { %1746 = vrcp.f32 %v1794_v54 }
 0x2b3   : > { %v852_v13 = vpop.permute.xlu0 %851 }
 0x2b4   : > { %v857_v14 = vsel %vm834_vm4, %v852_v13, 0 }
 0x2b5   : > { %v1741_v15 = vpop.eup %1740  ;;  %866 = vmatpush.bf16.msrb.mxu3 %v857_v14  ;;  %1142 = vmatpush.bf16.msra.mxu1 %v1678_v10 }
 0x2b6   : > { %v826_v16 = vmul.f32 %v1741_v15, %v1735_v62  ;;  %v948_v18 = vpop.permute.xlu2 %947  ;;  %v1743_v21 = vpop.eup %1742 }
 0x2b7   : > { %v953_v17 = vsel %vm834_vm4, %v948_v18, 0  ;;  %v943_v22 = vmul.f32 %v1743_v21, %v1731_v52  ;;  %v1745_v25 = vpop.eup %1744 }
 0x2b8   : > { %v828_v12 = vpack.c.bf16 %v826_v16, %v826_v16  ;;  %v944_v26 = vmul.f32 %v1745_v25, %v1737_v63  ;;  %v1747_v55 = vpop.eup %1746 }
 0x2b9   : > { %962 = vmatpush.bf16.msra.mxu3 %v953_v17  ;;  %v945_v23 = vpack.c.bf16 %v943_v22, %v943_v22  ;;  %v1057_v56 = vmul.f32 32.0, %v1747_v55  ;;  %vm1061_vm7 = vweird.f32 %v1747_v55 }
 0x2ba   : > { %v946_v27 = vpack.c.bf16 %v944_v26, %v944_v26 }
 0x2bb   : > { %v969_v19 = vpop.permute.xlu0 %968  ;;  %v1058_v57 = vsub.f32 1.0, %v1057_v56 }
 0x2bc   : > { %v974_v20 = vsel %vm834_vm4, %v969_v19, 0  ;;  %1605 = vmatmul.msk.bf16.vlgmr.msrb.gmra.mxu3 %vm804_vm3, %v828_v12 }
 0x2bd   : > { %983 = vmatpush.bf16.msrb.mxu3 %v974_v20  ;;  %v1059_v58 = vmul.f32 %v1747_v55, %v1058_v57  ;;  %v1683_v57 = vld [vmem:[%s1933_s30 + $0x18] sm:$0xff] }
 0x2bf   : > { %v1060_v59 = vadd.f32 %v1747_v55, %v1059_v58 }
 0x2cc   : > { %1608 = vmatmul.msk.bf16.vlgmr.msra.gmra.mxu3 %vm804_vm3, %v945_v23 }
 0x2dc   : > { %1609 = vmatmul.msk.bf16.vlgmr.msrb.gmra.mxu3 %vm804_vm3, %v946_v27  ;;  %v1724_v27 = vld [vmem:[%s2151_s21] ss:$0 sm:$0xff] }
 0x32f   : > { %v847_v28 = vpop.f32.mrf.mxu3 }
 0x330   : > { %v872_v29 = vpack.c.bf16 %v847_v28, %v847_v28 }
 0x332   : > { %875 = vst.msk [vmem:[#allocation3] sm:$0xf] %vm874_vm5, %v872_v29 }
 0x337   : > { %v849_v30 = vpop.f32.mrf.mxu3 }
 0x33f   : > { %v868_v31 = vpop.f32.mrf.mxu3 }
 0x340   : > { %v873_v32 = vpack.c.bf16 %v868_v31, %v868_v31  ;;  %v1725_v31 = vld [vmem:[%s2152_s18] ss:$0 sm:$0xff] }
 0x342   : > { %876 = vst.msk [vmem:[#allocation3 + $0x4] sm:$0xf] %vm874_vm5, %v873_v32 }
 0x347   : > { %v870_v33 = vpop.f32.mrf.mxu3 }
 0x34f   : > { %v964_v34 = vpop.f32.mrf.mxu3 }
 0x350   : > { %v989_v35 = vpack.c.bf16 %v964_v34, %v964_v34 }
 0x352   : > { %993 = vrot.lane.b32.xlu0 %v989_v35, %s1793_s4 }
 0x357   : > { %v966_v36 = vpop.f32.mrf.mxu3 }
 0x35f   : > { %v985_v37 = vpop.f32.mrf.mxu3 }
 0x360   : > { %v990_v38 = vpack.c.bf16 %v985_v37, %v985_v37 }
 0x362   : > { %995 = vrot.lane.b32.xlu0 %v990_v38, %s1793_s4  ;;  %v1726_v38 = vld [vmem:[%s673_s2] ss:$0 sm:$0xff] }
 0x367   : > { %v987_v39 = vpop.f32.mrf.mxu3 }
 0x3c4   : > { %v994_v42 = vpop.permute.xlu0 %993 }
 0x3c5   : > { %1000 = vst.msk [vmem:[#allocation3] sm:$0xf] %vm999_vm6, %v994_v42  ;;  %v1687_v42 = vld [vmem:[%s1933_s30 + $0x38] sm:$0xff] }
 0x3c6   : > { %1298 = vmatpush.bf16.msrb.mxu2 %v1687_v42 }
 0x3d4   : > { %v996_v43 = vpop.permute.xlu0 %995 }
 0x3d5   : > { %1001 = vst.msk [vmem:[#allocation3 + $0x4] sm:$0xf] %vm999_vm6, %v996_v43 }
 0x3dc   : > { %v1675_v44 = vld [vmem:[#allocation3] sm:$0xff] }
 0x3dd   : > { %1622 = vmatmul.msk.bf16.vlgmr.msra.gmra.mxu0 %vm729_vm1, %v1675_v44 }
 0x45a   : > { %v1041_v46 = vpop.f32.mrf.mxu0 }
 0x45b   : > { %v1042_v47 = vadd.f32 %v1723_v45, %v1041_v46 }
 0x45d   : > { %v1046_v48 = vadd.f32 %v1042_v47, %v1954_v4  ;;  %v2017_v4 = vsel %vm1061_vm7, %v1747_v55, %v1060_v59 }
 0x45f   : > { %v1050_v49 = vsel %vm729_vm1, %v1046_v48, 0.0 }
 0x460   : > { %1051 = vadd.xlane.f32.xlu2 %v1050_v49  ;;  %v1685_v49 = vld [vmem:[%s1933_s30 + $0x28] sm:$0xff] }
 0x462   : > { %v1043_v50 = vpop.f32.mrf.mxu0 }
 0x463   : > { %v1044_v51 = vadd.f32 %v1723_v45, %v1043_v50  ;;  %v1686_v45 = vld [vmem:[%s1933_s30 + $0x30] sm:$0xff] }
 0x464   : > { %1299 = vmatpush.bf16.msrb.mxu2 %v1686_v45 }
 0x465   : > { %v1047_v52 = vadd.f32 %v1044_v51, %v1956_v5 }
 0x467   : > { %v1053_v53 = vsel %vm729_vm1, %v1047_v52, 0.0 }
 0x468   : > { %1054 = vadd.xlane.f32.xlu0 %v1053_v53  ;;  %1300 = vmatpush.bf16.msrb.mxu2 %v1685_v49  ;;  %v1795_v49 = vmov -1.0  }
 0x4d3   : > { %v1052_v60 = vpop.xlane.xlu2 %1051 }
 0x4d4   : > { %v1063_v61 = vmul.f32 %v2017_v4, %v1052_v60 }
 0x4d6   : > { %v1065_v62 = vsub.f32 %v1046_v48, %v1063_v61 }
 0x4d8   : > { %v1067_v5 = vmul.f32 %v1065_v62, %v1065_v62 }
 0x4da   : > { %v1069_v63 = vsel %vm729_vm1, %v1067_v5, 0.0 }
 0x4db   : > { %v1055_v0 = vpop.xlane.xlu0 %1054  ;;  %1070 = vadd.xlane.f32.xlu1 %v1069_v63 }
 0x4dc   : > { %v1064_v1 = vmul.f32 %v2017_v4, %v1055_v0 }
 0x4de   : > { %v1066_v2 = vsub.f32 %v1047_v52, %v1064_v1  ;;  %v1684_v52 = vld [vmem:[%s1933_s30 + $0x20] sm:$0xff] }
 0x4df   : > { %1301 = vmatpush.bf16.msrb.mxu2 %v1684_v52 }
 0x4e0   : > { %v1068_v3 = vmul.f32 %v1066_v2, %v1066_v2 }
 0x4e2   : > { %v1072_v6 = vsel %vm729_vm1, %v1068_v3, 0.0 }
 0x4e3   : > { %1073 = vadd.xlane.f32.xlu1 %v1072_v6  ;;  %1302 = vmatpush.bf16.msrb.mxu2 %v1683_v57  ;;  %v1681_v6 = vld [vmem:[%s1933_s30 + $0x8] sm:$0xff] }
 0x54e   : > { %v1071_v8 = vpop.xlane.xlu1 %1070 }
 0x54f   : > { %v1075_v9 = vmul.f32 %v1071_v8, %v2017_v4 }
 0x551   : > { %v1077_v11 = vadd.f32 1e-12, %v1075_v9 }
 0x553   : > { %1748 = vrsqrt.f32 %v1077_v11  ;;  %vm1085_vm9 = vweird.f32 %v1077_v11 }
 0x556   : > { %v1074_v13 = vpop.xlane.xlu1 %1073 }
 0x557   : > { %v1076_v14 = vmul.f32 %v1074_v13, %v2017_v4 }
 0x559   : > { %v1749_v15 = vpop.eup %1748  ;;  %v1078_v16 = vadd.f32 1e-12, %v1076_v14 }
 0x55a   : > { %v1080_v18 = vmul.f32 %v1749_v15, %v1077_v11  ;;  %vm1086_vm8 = vweird.f32 %v1749_v15 }
 0x55b   : > { %1750 = vrsqrt.f32 %v1078_v16  ;;  %vm1087_vm10 = vmor %vm1085_vm9, %vm1086_vm8  ;;  %vm1095_vm12 = vweird.f32 %v1078_v16 }
 0x55c   : > { %v1081_v17 = vmul.f32 %v1749_v15, %v1080_v18 }
 0x55e   : > { %v1082_v12 = vmul.f32 0.5, %v1081_v17 }
 0x560   : > { %v1083_v19 = vsub.f32 1.5, %v1082_v12 }
 0x561   : > { %v1751_v20 = vpop.eup %1750 }
 0x562   : > { %v1084_v21 = vmul.f32 %v1749_v15, %v1083_v19  ;;  %v1090_v22 = vmul.f32 %v1751_v20, %v1078_v16  ;;  %vm1096_vm11 = vweird.f32 %v1751_v20 }
 0x563   : > { %vm1097_vm13 = vmor %vm1095_vm12, %vm1096_vm11 }
 0x564   : > { %v1091_v23 = vmul.f32 %v1751_v20, %v1090_v22  ;;  %v1088_v24 = vsel %vm1087_vm10, %v1749_v15, %v1084_v21  ;;  %v1680_v15 = vld [vmem:[%s1933_s30] sm:$0xff] }
 0x565   : > { %v1099_v28 = vmul.f32 %v1088_v24, %v1065_v62  ;;  %v1682_v62 = vld [vmem:[%s1933_s30 + $0x10] sm:$0xff] }
 0x566   : > { %v1092_v25 = vmul.f32 0.5, %v1091_v23  ;;  %1303 = vmatpush.bf16.msrb.mxu2 %v1682_v62 }
 0x567   : > { %v1104_v32 = vmul.f32 %v1724_v27, %v1099_v28 }
 0x568   : > { %v1093_v26 = vsub.f32 1.5, %v1092_v25 }
 0x569   : > { %v2037_v35 = vadd.f32 %v1725_v31, %v1104_v32 }
 0x56a   : > { %v1094_v29 = vmul.f32 %v1751_v20, %v1093_v26  ;;  %1304 = vmatpush.bf16.msrb.mxu2 %v1681_v6 }
 0x56c   : > { %v1098_v30 = vsel %vm1097_vm13, %v1751_v20, %v1094_v29 }
 0x56d   : > { %v1100_v33 = vmul.f32 %v1098_v30, %v1066_v2 }
 0x56e   : > { %1305 = vmatpush.bf16.msrb.mxu2 %v1680_v15 }
 0x56f   : > { %v1105_v34 = vmul.f32 %v1724_v27, %v1100_v33 }
 0x571   : > { %v2039_v36 = vadd.f32 %v1725_v31, %v1105_v34 }
 0x573   : > { %v1111_v37 = vpack.c.bf16 %v2039_v36, %v2037_v35 }
 0x575   : > { %1631 = vmatmul.msk.bf16.vlgmr.msra.gmra.mxu1 %vm729_vm1, %v1111_v37 }
 0x5f2   : > { %v1144_v39 = vpop.f32.mrf.mxu1 }
 0x5f3   : > { %v2049_v40 = vadd.f32 %v1726_v38, %v1144_v39 }
 0x5f5   : > { %v2052_v41 = vmul.f32 0.70710677, %v2049_v40 }
 0x5f7   : > { %v1157_v43 = vand.u32 2147483647, %v2052_v41  ;;  %vm1153_vm7 = vcmp.ge.f32.partialorder %v2052_v41, 0.0 }
 0x5f9   : > { %v1159_v44 = vmul.f32 0.3275911, %v1157_v43  ;;  %v1211_v8 = vsub.f32 0.0, %v1157_v43 }
 0x5fa   : > { %v1146_v46 = vpop.f32.mrf.mxu1 }
 0x5fb   : > { %v1161_v47 = vadd.f32 1.0, %v1159_v44  ;;  %v2057_v48 = vadd.f32 %v1726_v38, %v1146_v46  ;;  %v1213_v18 = vmul.f32 %v1211_v8, %v1157_v43 }
 0x5fd   : > { %1752 = vrcp.f32 %v1161_v47  ;;  %v2061_v50 = vmul.f32 0.70710677, %v2057_v48  ;;  %v1174_v59 = vand.u32 2147483648, %v1161_v47  ;;  %v1172_v61 = vand.u32 2147483647, %v1161_v47 }
 0x5fe   : > { %vm1168_vm15 = vweird.f32 %v1161_v47  ;;  %v1215_v22 = vmul.f32 1.442695, %v1213_v18 }
 0x5ff   : > { %v1158_v51 = vand.u32 2147483647, %v2061_v50  ;;  %v1175_v63 = vor.u32 1.1754944e-38, %v1174_v59  ;;  %vm1173_vm2 = vcmp.eq.f32.partialorder %v1172_v61, 8.507059e+37  ;;  %vm1154_vm8 = vcmp.ge.f32.partialorder %v2061_v50, 0.0 }
 0x600   : > { %v1150_v59 = vmul.f32 0.5, %v2057_v48 }
 0x601   : > { %v1160_v53 = vmul.f32 0.3275911, %v1158_v51  ;;  %v1212_v24 = vsub.f32 0.0, %v1158_v51 }
 0x603   : > { %v1753_v54 = vpop.eup %1752  ;;  %v1162_v56 = vadd.f32 1.0, %v1160_v53  ;;  %v1214_v29 = vmul.f32 %v1212_v24, %v1158_v51  ;;  %v1155_v51 = vsel %vm1153_vm7, 1.0, %v1795_v49 }
 0x604   : > { %v1164_v55 = vmul.f32 %v1753_v54, %v1161_v47  ;;  %vm1169_vm14 = vweird.f32 %v1753_v54 }
 0x605   : > { %1754 = vrcp.f32 %v1162_v56  ;;  %vm1170_vm0 = vmor %vm1168_vm15, %vm1169_vm14  ;;  %v1189_v11 = vand.u32 2147483648, %v1162_v56  ;;  %v1187_v14 = vand.u32 2147483647, %v1162_v56  ;;  %vm1183_vm4 = vweird.f32 %v1162_v56 }
 0x606   : > { %v1165_v58 = vsub.f32 1.0, %v1164_v55  ;;  %1756 = vpow2.f32 %v1215_v22  ;;  %v1217_v34 = vmul.f32 1.442695, %v1214_v29  ;;  %v1156_v55 = vsel %vm1154_vm8, 1.0, %v1795_v49 }
 0x607   : > { %v1190_v19 = vor.u32 1.1754944e-38, %v1189_v11  ;;  %vm1188_vm6 = vcmp.eq.f32.partialorder %v1187_v14, 8.507059e+37 }
 0x608   : > { %v1166_v60 = vmul.f32 %v1753_v54, %v1165_v58  ;;  %1758 = vpow2.f32 %v1217_v34  ;;  %v1149_v58 = vmul.f32 0.5, %v2049_v40 }
 0x60a   : > { %v1167_v5 = vadd.f32 %v1753_v54, %v1166_v60 }
 0x60b   : > { %v1755_v0 = vpop.eup %1754 }
 0x60c   : > { %v1171_v1 = vsel %vm1170_vm0, %v1753_v54, %v1167_v5  ;;  %v1179_v3 = vmul.f32 %v1755_v0, %v1162_v56  ;;  %vm1184_vm3 = vweird.f32 %v1755_v0  ;;  %v1757_v38 = vpop.eup %1756  ;;  %v1727_v5 = vld [vmem:[%s681_s0] ss:$0 sm:$0xff] }
 0x60d   : > { %v1176_v2 = vsel %vm1173_vm2, %v1175_v63, %v1171_v1  ;;  %vm1185_vm5 = vmor %vm1183_vm4, %vm1184_vm3 }
 0x60e   : > { %v1193_v7 = vmul.f32 1.0614054, %v1176_v2  ;;  %v1180_v9 = vsub.f32 1.0, %v1179_v3  ;;  %v1759_v47 = vpop.eup %1758 }
 0x610   : > { %v1195_v10 = vadd.f32 -1.4531521, %v1193_v7  ;;  %v1181_v13 = vmul.f32 %v1755_v0, %v1180_v9 }
 0x612   : > { %v1197_v16 = vmul.f32 %v1195_v10, %v1176_v2  ;;  %v1182_v17 = vadd.f32 %v1755_v0, %v1181_v13 }
 0x614   : > { %v1199_v12 = vadd.f32 1.4214138, %v1197_v16  ;;  %v1186_v20 = vsel %vm1185_vm5, %v1755_v0, %v1182_v17 }
 0x615   : > { %v1191_v23 = vsel %vm1188_vm6, %v1190_v19, %v1186_v20 }
 0x616   : > { %v1201_v21 = vmul.f32 %v1199_v12, %v1176_v2  ;;  %v1194_v25 = vmul.f32 1.0614054, %v1191_v23 }
 0x618   : > { %v1203_v26 = vadd.f32 -0.28449672, %v1201_v21  ;;  %v1196_v27 = vadd.f32 -1.4531521, %v1194_v25 }
 0x61a   : > { %v1205_v28 = vmul.f32 %v1203_v26, %v1176_v2  ;;  %v1198_v30 = vmul.f32 %v1196_v27, %v1191_v23 }
 0x61c   : > { %v1207_v31 = vadd.f32 0.2548296, %v1205_v28  ;;  %v1200_v32 = vadd.f32 1.4214138, %v1198_v30  ;;  %v1728_v28 = vld [vmem:[%s684_s3] ss:$0 sm:$0xff] }
 0x61d   : > { %v1729_v30 = vld [vmem:[%s687_s1] ss:$0 sm:$0xff]  ;;  %s2153_s3 = sld [smem:[#allocation12_spill]] (!%p1664_p6) }
 0x61e   : > { %v1209_v33 = vmul.f32 %v1207_v31, %v1176_v2  ;;  %v1202_v37 = vmul.f32 %v1200_v32, %v1191_v23 }
 0x620   : > { %v1219_v39 = vmul.f32 %v1757_v38, %v1209_v33  ;;  %v1204_v42 = vadd.f32 -0.28449672, %v1202_v37 }
 0x622   : > { %v1206_v43 = vmul.f32 %v1204_v42, %v1191_v23  ;;  %v1221_v44 = vsub.f32 1.0, %v1219_v39 }
 0x624   : > { %v1208_v45 = vadd.f32 0.2548296, %v1206_v43  ;;  %v1223_v52 = vmul.f32 %v1221_v44, %v1155_v51 }
 0x626   : > { %v1210_v46 = vmul.f32 %v1208_v45, %v1191_v23  ;;  %v1225_v56 = vadd.f32 1.0, %v1223_v52 }
 0x628   : > { %v1220_v53 = vmul.f32 %v1759_v47, %v1210_v46  ;;  %v1227_v60 = vmul.f32 %v1225_v56, %v1149_v58 }
 0x62a   : > { %v1222_v54 = vsub.f32 1.0, %v1220_v53 }
 0x62c   : > { %v1224_v57 = vmul.f32 %v1222_v54, %v1156_v55 }
 0x62e   : > { %v1226_v41 = vadd.f32 1.0, %v1224_v57 }
 0x630   : > { %v1228_v61 = vmul.f32 %v1226_v41, %v1150_v59 }
 0x632   : > { %v1229_v62 = vpack.c.bf16 %v1228_v61, %v1227_v60 }
 0x634   : > { %1306 = vmatmul.bf16.vlgmr.msrb.gmra.mxu2 %v1229_v62 }
 0x6b7   : > { %v1307_v50 = vpop.f32.mrf.mxu2 }
 0x6b8   : > { %v1308_v63 = vadd.f32 %v1727_v5, %v1307_v50 }
 0x6ba   : > { %v1312_v0 = vadd.f32 %v1308_v63, %v2037_v35 }
 0x6bc   : > { %v1316_v1 = vsel %vm729_vm1, %v1312_v0, 0.0 }
 0x6bd   : > { %1317 = vadd.xlane.f32.xlu1 %v1316_v1 }
 0x6bf   : > { %v1309_v40 = vpop.f32.mrf.mxu2 }
 0x6c0   : > { %v1310_v2 = vadd.f32 %v1727_v5, %v1309_v40 }
 0x6c2   : > { %v1313_v48 = vadd.f32 %v1310_v2, %v2039_v36 }
 0x6c4   : > { %v1319_v3 = vsel %vm729_vm1, %v1313_v48, 0.0 }
 0x6c5   : > { %1320 = vadd.xlane.f32.xlu2 %v1319_v3 }
 0x730   : > { %v1318_v6 = vpop.xlane.xlu1 %1317 }
 0x731   : > { %v1322_v7 = vmul.f32 %v1318_v6, %v2017_v4 }
 0x733   : > { %v1324_v8 = vsub.f32 %v1312_v0, %v1322_v7 }
 0x735   : > { %v1326_v9 = vmul.f32 %v1324_v8, %v1324_v8 }
 0x737   : > { %v1328_v10 = vsel %vm729_vm1, %v1326_v9, 0.0 }
 0x738   : > { %v1321_v11 = vpop.xlane.xlu2 %1320  ;;  %1329 = vadd.xlane.f32.xlu1 %v1328_v10 }
 0x739   : > { %v1323_v35 = vmul.f32 %v1321_v11, %v2017_v4 }
 0x73b   : > { %v1325_v13 = vsub.f32 %v1313_v48, %v1323_v35 }
 0x73d   : > { %v1327_v14 = vmul.f32 %v1325_v13, %v1325_v13 }
 0x73f   : > { %v1331_v15 = vsel %vm729_vm1, %v1327_v14, 0.0 }
 0x740   : > { %1332 = vadd.xlane.f32.xlu0 %v1331_v15 }
 0x7ab   : > { %v1330_v36 = vpop.xlane.xlu1 %1329 }
 0x7ac   : > { %v1334_v16 = vmul.f32 %v1330_v36, %v2017_v4 }
 0x7ae   : > { %v1336_v18 = vadd.f32 1e-12, %v1334_v16 }
 0x7b0   : > { %1760 = vrsqrt.f32 %v1336_v18  ;;  %vm1344_vm10 = vweird.f32 %v1336_v18 }
 0x7b3   : > { %v1333_v17 = vpop.xlane.xlu0 %1332 }
 0x7b4   : > { %v1335_v12 = vmul.f32 %v1333_v17, %v2017_v4 }
 0x7b6   : > { %v1761_v19 = vpop.eup %1760  ;;  %v1337_v20 = vadd.f32 1e-12, %v1335_v12 }
 0x7b7   : > { %v1339_v21 = vmul.f32 %v1761_v19, %v1336_v18  ;;  %vm1345_vm9 = vweird.f32 %v1761_v19 }
 0x7b8   : > { %1762 = vrsqrt.f32 %v1337_v20  ;;  %vm1346_vm11 = vmor %vm1344_vm10, %vm1345_vm9  ;;  %vm1354_vm13 = vweird.f32 %v1337_v20 }
 0x7b9   : > { %v1340_v22 = vmul.f32 %v1761_v19, %v1339_v21 }
 0x7bb   : > { %v1341_v23 = vmul.f32 0.5, %v1340_v22 }
 0x7bd   : > { %v1342_v24 = vsub.f32 1.5, %v1341_v23 }
 0x7be   : > { %v1763_v25 = vpop.eup %1762 }
 0x7bf   : > { %v1343_v26 = vmul.f32 %v1761_v19, %v1342_v24  ;;  %v1349_v27 = vmul.f32 %v1763_v25, %v1337_v20  ;;  %vm1355_vm12 = vweird.f32 %v1763_v25 }
 0x7c0   : > { %vm1356_vm14 = vmor %vm1354_vm13, %vm1355_vm12 }
 0x7c1   : > { %v1347_v4 = vsel %vm1346_vm11, %v1761_v19, %v1343_v26  ;;  %v1350_v29 = vmul.f32 %v1763_v25, %v1349_v27 }
 0x7c2   : > { %v1358_v31 = vmul.f32 %v1347_v4, %v1324_v8 }
 0x7c3   : > { %v1351_v32 = vmul.f32 0.5, %v1350_v29 }
 0x7c4   : > { %v1363_v33 = vmul.f32 %v1728_v28, %v1358_v31 }
 0x7c5   : > { %v1352_v34 = vsub.f32 1.5, %v1351_v32 }
 0x7c6   : > { %v1368_v37 = vadd.f32 %v1729_v30, %v1363_v33 }
 0x7c7   : > { %v1353_v38 = vmul.f32 %v1763_v25, %v1352_v34 }
 0x7c8   : > { %1370 = vst.msk [vmem:[#allocation2] sm:$0xff] %vm729_vm1, %v1368_v37 }
 0x7c9   : > { %v1357_v39 = vsel %vm1356_vm14, %v1763_v25, %v1353_v38 }
 0x7ca   : > { %v1359_v42 = vmul.f32 %v1357_v39, %v1325_v13 }
 0x7cc   : > { %v1364_v43 = vmul.f32 %v1728_v28, %v1359_v42  ;;  %1375 = sbr.rel (%p1664_p6) target bundleno = 2005 (0x7d5), region = 84 }
 0x7ce   : > { %v1369_v44 = vadd.f32 %v1729_v30, %v1364_v43 }
 0x7d0   : > { %1371 = vst.msk [vmem:[#allocation2 + $0x8] sm:$0xff] %vm729_vm1, %v1369_v44 }
 0x7d1   : > { %v1376_v45 = vpack.c.bf16 %v1368_v37, %v1368_v37  ;;  %vm1378_vm15 = vcmask 257024   ;;  %v1377_v46 = vpack.c.bf16 %v1369_v44, %v1369_v44 }
 0x7d3   : > { %1379 = vst.msk [vmem:[%s2153_s3] sm:$0xf] %vm1378_vm15, %v1376_v45 }
 0x7d4   : > { %1380 = vst.msk [vmem:[%s2153_s3 + $0x4] sm:$0xf] %vm1378_vm15, %v1377_v46 }
 0x7d5 PF: > { %s2154_s27 = sld [smem:[#allocation5_spill]] }
 0x7d6   : > { %s2155_s29 = sld [smem:[#allocation4_spill]] }
 0x7d7   : > { %s2156_s30 = sld [smem:[#allocation6_spill]] }
 0x7db   : > { %s24_s15 = sadd.s32 1, %s2154_s27  }
 0x7dc   : > { %p21_p7 = scmp.ge.s32.totalorder %s24_s15, 4  }
 0x7de   :  { %23 = sbr.rel (!%p21_p7) target bundleno = 7 (0x7), region = 153 }

</bundles_post_ra>
